<compile_context>
chip_gen: v6e
topology: v6e:2x2x1
jax: 0.10.0
libtpu: 0.0.40
codegen_flags: <defaults>
</compile_context>

<pallas_src>
import functools

import jax
import jax.numpy as jnp
import numpy as np
from jax.experimental import pallas as pl
from jax.experimental.pallas import tpu as pltpu


def _coupling_kernel(reverse, width, batch_block,
                     zpad_ref, mpad_ref, cmask_ref,
                     wst_ref, bst_ref, sfac_ref, isfac_ref,
                     z_out_ref, ldj_ref):
    """One block of `batch_block` samples per grid step. Lane-dense (C, H*W) layout."""
    W = width
    B = batch_block
    C2 = bst_ref.shape[0]                 # 2*C
    C = C2 // 2
    HWp = zpad_ref.shape[-1]              # padded flattened spatial: HW + 2*(W+1)
    HW = HWp - 2 * (W + 1)

    mpad = mpad_ref[...]                                  # (C, HWp) f32, grid-invariant
    inv_m = 1.0 - mpad[:, W + 1:W + 1 + HW]               # (C, HW)  (1 - mask)
    cmask = cmask_ref[...]                                # (2, HW)  bf16 column-validity
    sign = -1.0 if reverse else 1.0

    for b in range(B):                                    # static unroll over the block
        zpad = zpad_ref[b]                                # (C, HWp) f32, zero padded
        z = zpad[:, W + 1:W + 1 + HW]                     # (C, HW)  original z
        # masked network input; bf16 once for the MXU (f32 accumulation below)
        zin_pad = (zpad * mpad).astype(jnp.bfloat16)      # (C, HWp) bf16

        # 3x3 SAME conv fused in VMEM: 9 static lane-slices (shifted views) of the padded
        # image + per-tap (2C,C)@(C,HW) matmuls (s and t halves stacked), f32 accumulate.
        acc = jnp.zeros((C2, HW), jnp.float32)
        for dy in range(3):
            for dx in range(3):
                k = dy * 3 + dx
                start = (W + 1) + (dy - 1) * W + (dx - 1)
                zs = zin_pad[:, start:start + HW]         # (C, HW) shifted view
                if dx == 0:                               # reading col w-1: invalid at w == 0
                    zs = zs * cmask[0:1, :]
                elif dx == 2:                             # reading col w+1: invalid at w == W-1
                    zs = zs * cmask[1:2, :]
                acc = acc + jnp.dot(wst_ref[k], zs,
                                    preferred_element_type=jnp.float32)
        acc = acc + bst_ref[...]                          # conv bias (2C, 1)
        s = acc[:C, :]
        t = acc[C:, :]

        # stabilized scaling: s = tanh(s / s_fac) * s_fac   (exp() hoisted to the wrapper)
        s = jnp.tanh(s * isfac_ref[...]) * sfac_ref[...]

        # only transform the un-masked elements
        s = s * inv_m
        t = t * inv_m

        if not reverse:
            z_out_ref[b] = (z + t) * jnp.exp(s)
        else:
            z_out_ref[b] = z * jnp.exp(-s) - t

        # per-sample log-det-Jacobian contribution: sign * sum(s) over (C, H, W)
        tot = jnp.sum(s, axis=1, keepdims=True)           # (C, 1) cross-lane reduce
        tot = jnp.sum(tot, axis=0, keepdims=True)         # (1, 1) cross-sublane reduce
        ldj_ref[b] = sign * tot                           # tiny (1,1) store per sample


def _const_spec(shape):
    """Grid-invariant block: full array, same block index every grid step (single DMA)."""
    return pl.BlockSpec(shape, lambda n: (0,) * len(shape))


def coupling_forward(z, ldj, mask, conv_w, conv_b, scaling_factor, reverse=False):
    """Pallas-backed CouplingLayer.forward (orig_img=None branch).

    z:    (N, C, H, W) float32 (NCHW, matching PyTorch)
    ldj:  (N,) float32
    mask: broadcastable to (1, C, H, W), binary
    conv_w: (2C, C, 3, 3), conv_b: (2C,), scaling_factor: (C,)
    """
    N, C, H, W = z.shape
    HW = H * W
    HWp = HW + 2 * (W + 1)
    f32, bf16 = jnp.float32, jnp.bfloat16

    # batch block size: largest divisor of N up to 8 (amortizes per-grid-step overhead)
    B = 1
    for d in range(1, min(N, 8) + 1):
        if N % d == 0:
            B = d

    # ---- layout plumbing (cheap XLA ops, outside the kernel) ----
    z_flat = z.astype(f32).reshape(N, C, HW)                           # free reshape of NCHW
    z_pad = jnp.pad(z_flat, ((0, 0), (0, 0), (W + 1, W + 1)))          # (N, C, HWp), ~13% of z

    mask_c = jnp.broadcast_to(mask, (1, C, H, W)).astype(f32).reshape(C, HW)
    mask_pad = jnp.pad(mask_c, ((0, 0), (W + 1, W + 1)))               # (C, HWp)

    wcol = jnp.arange(HW, dtype=jnp.int32) % W
    cmask = jnp.stack([(wcol > 0), (wcol < W - 1)]).astype(bf16)       # (2, HW)

    # conv weights per 3x3 tap: (3,3,2C,C) -> (9, 2C, C); s rows are [:C], t rows are [C:]
    w_st = jnp.transpose(conv_w, (2, 3, 0, 1)).reshape(9, 2 * C, C).astype(bf16)
    b_st = conv_b.reshape(2 * C, 1).astype(f32)
    s_fac = jnp.exp(scaling_factor).reshape(C, 1).astype(f32)          # hoisted exp()
    inv_s_fac = jnp.exp(-scaling_factor).reshape(C, 1).astype(f32)

    kernel = functools.partial(_coupling_kernel, reverse, W, B)

    z_out_flat, ldj_blk = pl.pallas_call(
        kernel,
        grid=(N // B,),                                                # B samples per step
        in_specs=[
            pl.BlockSpec((B, C, HWp), lambda n: (n, 0, 0)),            # z_pad (per block)
            _const_spec((C, HWp)),                                     # mask_pad
            _const_spec((2, HW)),                                      # cmask
            _const_spec((9, 2 * C, C)),                                # stacked conv weights
            _const_spec((2 * C, 1)),                                   # conv bias
            _const_spec((C, 1)),                                       # s_fac
            _const_spec((C, 1)),                                       # inv_s_fac
        ],
        out_specs=(
            pl.BlockSpec((B, C, HW), lambda n: (n, 0, 0)),             # z_out (per block)
            pl.BlockSpec((B, 1, 1), lambda n: (n, 0, 0)),              # per-sample ldj scalar
        ),
        out_shape=(
            jax.ShapeDtypeStruct((N, C, HW), f32),
            jax.ShapeDtypeStruct((N, 1, 1), f32),
        ),
        compiler_params=pltpu.CompilerParams(
            dimension_semantics=("parallel",),          # shard sample blocks across TCs on v7x
            vmem_limit_bytes=32 * 1024 * 1024,          # safe on v5e/v6e/v7x; blocks are small
        ),
    )(z_pad, mask_pad, cmask, w_st, b_st, s_fac, inv_s_fac)

    z_out = z_out_flat.reshape(N, C, H, W)              # free reshape back to NCHW
    ldj_out = ldj + ldj_blk[:, 0, 0]                    # running ldj accumulated in the wrapper
    return z_out, ldj_out


def coupling_reference(z, ldj, mask, conv_w, conv_b, scaling_factor, reverse=False):
    """Pure-JAX reference mirroring the PyTorch forward (network = bf16 3x3 conv, f32 accumulate)."""
    N, C, H, W = z.shape
    mask_b = jnp.broadcast_to(mask, (N, C, H, W)).astype(z.dtype)
    z_in = z * mask_b
    nn_out = jax.lax.conv_general_dilated(
        z_in.astype(jnp.bfloat16), conv_w.astype(jnp.bfloat16),
        window_strides=(1, 1), padding="SAME",
        dimension_numbers=("NCHW", "OIHW", "NCHW"),
        preferred_element_type=jnp.float32) + conv_b.reshape(1, -1, 1, 1)
    s, t = jnp.split(nn_out, 2, axis=1)
    s_fac = jnp.exp(scaling_factor).reshape(1, -1, 1, 1)
    s = jnp.tanh(s / s_fac) * s_fac
    s = s * (1 - mask_b)
    t = t * (1 - mask_b)
    if not reverse:
        z_out = (z + t) * jnp.exp(s)
        ldj_out = ldj + s.sum(axis=(1, 2, 3))
    else:
        z_out = z * jnp.exp(-s) - t
        ldj_out = ldj - s.sum(axis=(1, 2, 3))
    return z_out, ldj_out


def create_checkerboard_mask(h, w, invert=False):
    xx, yy = jnp.meshgrid(jnp.arange(h), jnp.arange(w), indexing="ij")
    mask = ((xx + yy) % 2).astype(jnp.float32).reshape(1, 1, h, w)
    if invert:
        mask = 1.0 - mask
    return mask


if __name__ == "__main__":
    N, C, H, W = 2, 4, 16, 16

    key = jax.random.PRNGKey(0)
    k_z, k_w, k_b, k_s = jax.random.split(key, 4)

    z = jax.random.normal(k_z, (N, C, H, W), dtype=jnp.float32)
    ldj = jnp.zeros((N,), dtype=jnp.float32)
    mask = create_checkerboard_mask(H, W)

    # Deterministic synthetic parameters (module __init__ shapes):
    conv_w = 0.1 * jax.random.normal(k_w, (2 * C, C, 3, 3), dtype=jnp.float32)
    conv_b = 0.1 * jax.random.normal(k_b, (2 * C,), dtype=jnp.float32)
    # nn.Parameter(torch.zeros(c_in)) in __init__; small nonzero values exercise the rescaling path.
    scaling_factor = 0.05 * jax.random.normal(k_s, (C,), dtype=jnp.float32)

    fwd = jax.jit(functools.partial(coupling_forward, reverse=False))
    rev = jax.jit(functools.partial(coupling_forward, reverse=True))

    # forward
    z_out, ldj_out = fwd(z, ldj, mask, conv_w, conv_b, scaling_factor)
    jax.block_until_ready((z_out, ldj_out))
    z_ref, ldj_ref = coupling_reference(z, ldj, mask, conv_w, conv_b, scaling_factor, reverse=False)
    np.testing.assert_allclose(np.asarray(z_out), np.asarray(z_ref), rtol=1e-3, atol=1e-3)
    np.testing.assert_allclose(np.asarray(ldj_out), np.asarray(ldj_ref), rtol=1e-3, atol=1e-3)

    # reverse must invert the forward pass (and cancel its ldj contribution)
    z_rec, ldj_rec = rev(z_out, ldj_out, mask, conv_w, conv_b, scaling_factor)
    jax.block_until_ready((z_rec, ldj_rec))
    np.testing.assert_allclose(np.asarray(z_rec), np.asarray(z), rtol=1e-3, atol=1e-3)
    np.testing.assert_allclose(np.asarray(ldj_rec), np.asarray(ldj), rtol=1e-3, atol=1e-3)

    print("KERNEL_OK")
</pallas_src>

<mosaic_0001>
module attributes {stable_mosaic.version = 11 : i64} {
  func.func @_coupling_kernel(%arg0: i32, %arg1: memref<2x4x290xf32, #tpu.memory_space<vmem>>, %arg2: memref<4x290xf32, #tpu.memory_space<vmem>>, %arg3: memref<2x256xbf16, #tpu.memory_space<vmem>>, %arg4: memref<9x8x4xbf16, #tpu.memory_space<vmem>>, %arg5: memref<8x1xf32, #tpu.memory_space<vmem>>, %arg6: memref<4x1xf32, #tpu.memory_space<vmem>>, %arg7: memref<4x1xf32, #tpu.memory_space<vmem>>, %arg8: memref<2x4x256xf32, #tpu.memory_space<vmem>>, %arg9: memref<2x1x1xf32, #tpu.memory_space<vmem>>) attributes {dimension_semantics = [#tpu.dimension_semantics<parallel>], iteration_bounds = array<i64: 1>, scalar_prefetch = 0 : i64, scratch_operands = 0 : i64, tpu.core_type = #tpu.core_type<tc>, window_params = [{transform_indices = @transform_0, window_bounds = array<i64: 2, 4, 290>}, {pipeline_mode = #tpu.pipeline_mode<synchronous>, transform_indices = @transform_1, window_bounds = array<i64: 4, 290>}, {pipeline_mode = #tpu.pipeline_mode<synchronous>, transform_indices = @transform_2, window_bounds = array<i64: 2, 256>}, {pipeline_mode = #tpu.pipeline_mode<synchronous>, transform_indices = @transform_3, window_bounds = array<i64: 9, 8, 4>}, {pipeline_mode = #tpu.pipeline_mode<synchronous>, transform_indices = @transform_4, window_bounds = array<i64: 8, 1>}, {pipeline_mode = #tpu.pipeline_mode<synchronous>, transform_indices = @transform_5, window_bounds = array<i64: 4, 1>}, {pipeline_mode = #tpu.pipeline_mode<synchronous>, transform_indices = @transform_6, window_bounds = array<i64: 4, 1>}, {transform_indices = @transform_7, window_bounds = array<i64: 2, 4, 256>}, {transform_indices = @transform_8, window_bounds = array<i64: 2, 1, 1>}]} {
    %c0 = arith.constant 0 : index
    %c0_0 = arith.constant 0 : index
    %0 = vector.load %arg2[%c0, %c0_0] : memref<4x290xf32, #tpu.memory_space<vmem>>, vector<4x290xf32>
    %1 = vector.extract_strided_slice %0 {offsets = [0, 17], sizes = [4, 256], strides = [1, 1]} : vector<4x290xf32> to vector<4x256xf32>
    %cst = arith.constant 1.000000e+00 : f32
    %2 = vector.broadcast %cst : f32 to vector<4x256xf32>
    %3 = arith.subf %2, %1 : vector<4x256xf32>
    %c0_1 = arith.constant 0 : index
    %c0_2 = arith.constant 0 : index
    %4 = vector.load %arg3[%c0_1, %c0_2] : memref<2x256xbf16, #tpu.memory_space<vmem>>, vector<2x256xbf16>
    %c0_3 = arith.constant 0 : index
    %c0_4 = arith.constant 0 : index
    %c0_5 = arith.constant 0 : index
    %5 = vector.load %arg1[%c0_3, %c0_4, %c0_5] : memref<2x4x290xf32, #tpu.memory_space<vmem>>, vector<1x4x290xf32>
    %6 = vector.shape_cast %5 : vector<1x4x290xf32> to vector<4x290xf32>
    %7 = vector.extract_strided_slice %6 {offsets = [0, 17], sizes = [4, 256], strides = [1, 1]} : vector<4x290xf32> to vector<4x256xf32>
    %8 = arith.mulf %6, %0 : vector<4x290xf32>
    %9 = arith.truncf %8 : vector<4x290xf32> to vector<4x290xbf16>
    %cst_6 = arith.constant 0.000000e+00 : f32
    %10 = vector.broadcast %cst_6 : f32 to vector<8x256xf32>
    %11 = vector.extract_strided_slice %9 {offsets = [0, 0], sizes = [4, 256], strides = [1, 1]} : vector<4x290xbf16> to vector<4x256xbf16>
    %12 = vector.extract_strided_slice %4 {offsets = [0, 0], sizes = [1, 256], strides = [1, 1]} : vector<2x256xbf16> to vector<1x256xbf16>
    %13 = vector.broadcast %12 : vector<1x256xbf16> to vector<4x256xbf16>
    %14 = arith.mulf %11, %13 : vector<4x256xbf16>
    %c0_7 = arith.constant 0 : index
    %c0_8 = arith.constant 0 : index
    %c0_9 = arith.constant 0 : index
    %15 = vector.load %arg4[%c0_7, %c0_8, %c0_9] : memref<9x8x4xbf16, #tpu.memory_space<vmem>>, vector<1x8x4xbf16>
    %16 = vector.shape_cast %15 : vector<1x8x4xbf16> to vector<8x4xbf16>
    %cst_10 = arith.constant dense<0.000000e+00> : vector<8x256xf32>
    %17 = tpu.matmul %16, %14, %cst_10 {dimension_numbers = #tpu.dot_dimension_numbers<[1], [0], [0], [1], [0, 0, 1, 1], [], []>} : vector<8x4xbf16>, vector<4x256xbf16>, vector<8x256xf32> -> vector<8x256xf32>
    %18 = arith.addf %10, %17 : vector<8x256xf32>
    %19 = vector.extract_strided_slice %9 {offsets = [0, 1], sizes = [4, 256], strides = [1, 1]} : vector<4x290xbf16> to vector<4x256xbf16>
    %c1 = arith.constant 1 : index
    %c0_11 = arith.constant 0 : index
    %c0_12 = arith.constant 0 : index
    %20 = vector.load %arg4[%c1, %c0_11, %c0_12] : memref<9x8x4xbf16, #tpu.memory_space<vmem>>, vector<1x8x4xbf16>
    %21 = vector.shape_cast %20 : vector<1x8x4xbf16> to vector<8x4xbf16>
    %cst_13 = arith.constant dense<0.000000e+00> : vector<8x256xf32>
    %22 = tpu.matmul %21, %19, %cst_13 {dimension_numbers = #tpu.dot_dimension_numbers<[1], [0], [0], [1], [0, 0, 1, 1], [], []>} : vector<8x4xbf16>, vector<4x256xbf16>, vector<8x256xf32> -> vector<8x256xf32>
    %23 = arith.addf %18, %22 : vector<8x256xf32>
    %24 = vector.extract_strided_slice %9 {offsets = [0, 2], sizes = [4, 256], strides = [1, 1]} : vector<4x290xbf16> to vector<4x256xbf16>
    %25 = vector.extract_strided_slice %4 {offsets = [1, 0], sizes = [1, 256], strides = [1, 1]} : vector<2x256xbf16> to vector<1x256xbf16>
    %26 = vector.broadcast %25 : vector<1x256xbf16> to vector<4x256xbf16>
    %27 = arith.mulf %24, %26 : vector<4x256xbf16>
    %c2 = arith.constant 2 : index
    %c0_14 = arith.constant 0 : index
    %c0_15 = arith.constant 0 : index
    %28 = vector.load %arg4[%c2, %c0_14, %c0_15] : memref<9x8x4xbf16, #tpu.memory_space<vmem>>, vector<1x8x4xbf16>
    %29 = vector.shape_cast %28 : vector<1x8x4xbf16> to vector<8x4xbf16>
    %cst_16 = arith.constant dense<0.000000e+00> : vector<8x256xf32>
    %30 = tpu.matmul %29, %27, %cst_16 {dimension_numbers = #tpu.dot_dimension_numbers<[1], [0], [0], [1], [0, 0, 1, 1], [], []>} : vector<8x4xbf16>, vector<4x256xbf16>, vector<8x256xf32> -> vector<8x256xf32>
    %31 = arith.addf %23, %30 : vector<8x256xf32>
    %32 = vector.extract_strided_slice %9 {offsets = [0, 16], sizes = [4, 256], strides = [1, 1]} : vector<4x290xbf16> to vector<4x256xbf16>
    %33 = vector.extract_strided_slice %4 {offsets = [0, 0], sizes = [1, 256], strides = [1, 1]} : vector<2x256xbf16> to vector<1x256xbf16>
    %34 = vector.broadcast %33 : vector<1x256xbf16> to vector<4x256xbf16>
    %35 = arith.mulf %32, %34 : vector<4x256xbf16>
    %c3 = arith.constant 3 : index
    %c0_17 = arith.constant 0 : index
    %c0_18 = arith.constant 0 : index
    %36 = vector.load %arg4[%c3, %c0_17, %c0_18] : memref<9x8x4xbf16, #tpu.memory_space<vmem>>, vector<1x8x4xbf16>
    %37 = vector.shape_cast %36 : vector<1x8x4xbf16> to vector<8x4xbf16>
    %cst_19 = arith.constant dense<0.000000e+00> : vector<8x256xf32>
    %38 = tpu.matmul %37, %35, %cst_19 {dimension_numbers = #tpu.dot_dimension_numbers<[1], [0], [0], [1], [0, 0, 1, 1], [], []>} : vector<8x4xbf16>, vector<4x256xbf16>, vector<8x256xf32> -> vector<8x256xf32>
    %39 = arith.addf %31, %38 : vector<8x256xf32>
    %40 = vector.extract_strided_slice %9 {offsets = [0, 17], sizes = [4, 256], strides = [1, 1]} : vector<4x290xbf16> to vector<4x256xbf16>
    %c4 = arith.constant 4 : index
    %c0_20 = arith.constant 0 : index
    %c0_21 = arith.constant 0 : index
    %41 = vector.load %arg4[%c4, %c0_20, %c0_21] : memref<9x8x4xbf16, #tpu.memory_space<vmem>>, vector<1x8x4xbf16>
    %42 = vector.shape_cast %41 : vector<1x8x4xbf16> to vector<8x4xbf16>
    %cst_22 = arith.constant dense<0.000000e+00> : vector<8x256xf32>
    %43 = tpu.matmul %42, %40, %cst_22 {dimension_numbers = #tpu.dot_dimension_numbers<[1], [0], [0], [1], [0, 0, 1, 1], [], []>} : vector<8x4xbf16>, vector<4x256xbf16>, vector<8x256xf32> -> vector<8x256xf32>
    %44 = arith.addf %39, %43 : vector<8x256xf32>
    %45 = vector.extract_strided_slice %9 {offsets = [0, 18], sizes = [4, 256], strides = [1, 1]} : vector<4x290xbf16> to vector<4x256xbf16>
    %46 = vector.extract_strided_slice %4 {offsets = [1, 0], sizes = [1, 256], strides = [1, 1]} : vector<2x256xbf16> to vector<1x256xbf16>
    %47 = vector.broadcast %46 : vector<1x256xbf16> to vector<4x256xbf16>
    %48 = arith.mulf %45, %47 : vector<4x256xbf16>
    %c5 = arith.constant 5 : index
    %c0_23 = arith.constant 0 : index
    %c0_24 = arith.constant 0 : index
    %49 = vector.load %arg4[%c5, %c0_23, %c0_24] : memref<9x8x4xbf16, #tpu.memory_space<vmem>>, vector<1x8x4xbf16>
    %50 = vector.shape_cast %49 : vector<1x8x4xbf16> to vector<8x4xbf16>
    %cst_25 = arith.constant dense<0.000000e+00> : vector<8x256xf32>
    %51 = tpu.matmul %50, %48, %cst_25 {dimension_numbers = #tpu.dot_dimension_numbers<[1], [0], [0], [1], [0, 0, 1, 1], [], []>} : vector<8x4xbf16>, vector<4x256xbf16>, vector<8x256xf32> -> vector<8x256xf32>
    %52 = arith.addf %44, %51 : vector<8x256xf32>
    %53 = vector.extract_strided_slice %9 {offsets = [0, 32], sizes = [4, 256], strides = [1, 1]} : vector<4x290xbf16> to vector<4x256xbf16>
    %54 = vector.extract_strided_slice %4 {offsets = [0, 0], sizes = [1, 256], strides = [1, 1]} : vector<2x256xbf16> to vector<1x256xbf16>
    %55 = vector.broadcast %54 : vector<1x256xbf16> to vector<4x256xbf16>
    %56 = arith.mulf %53, %55 : vector<4x256xbf16>
    %c6 = arith.constant 6 : index
    %c0_26 = arith.constant 0 : index
    %c0_27 = arith.constant 0 : index
    %57 = vector.load %arg4[%c6, %c0_26, %c0_27] : memref<9x8x4xbf16, #tpu.memory_space<vmem>>, vector<1x8x4xbf16>
    %58 = vector.shape_cast %57 : vector<1x8x4xbf16> to vector<8x4xbf16>
    %cst_28 = arith.constant dense<0.000000e+00> : vector<8x256xf32>
    %59 = tpu.matmul %58, %56, %cst_28 {dimension_numbers = #tpu.dot_dimension_numbers<[1], [0], [0], [1], [0, 0, 1, 1], [], []>} : vector<8x4xbf16>, vector<4x256xbf16>, vector<8x256xf32> -> vector<8x256xf32>
    %60 = arith.addf %52, %59 : vector<8x256xf32>
    %61 = vector.extract_strided_slice %9 {offsets = [0, 33], sizes = [4, 256], strides = [1, 1]} : vector<4x290xbf16> to vector<4x256xbf16>
    %c7 = arith.constant 7 : index
    %c0_29 = arith.constant 0 : index
    %c0_30 = arith.constant 0 : index
    %62 = vector.load %arg4[%c7, %c0_29, %c0_30] : memref<9x8x4xbf16, #tpu.memory_space<vmem>>, vector<1x8x4xbf16>
    %63 = vector.shape_cast %62 : vector<1x8x4xbf16> to vector<8x4xbf16>
    %cst_31 = arith.constant dense<0.000000e+00> : vector<8x256xf32>
    %64 = tpu.matmul %63, %61, %cst_31 {dimension_numbers = #tpu.dot_dimension_numbers<[1], [0], [0], [1], [0, 0, 1, 1], [], []>} : vector<8x4xbf16>, vector<4x256xbf16>, vector<8x256xf32> -> vector<8x256xf32>
    %65 = arith.addf %60, %64 : vector<8x256xf32>
    %66 = vector.extract_strided_slice %9 {offsets = [0, 34], sizes = [4, 256], strides = [1, 1]} : vector<4x290xbf16> to vector<4x256xbf16>
    %67 = vector.extract_strided_slice %4 {offsets = [1, 0], sizes = [1, 256], strides = [1, 1]} : vector<2x256xbf16> to vector<1x256xbf16>
    %68 = vector.broadcast %67 : vector<1x256xbf16> to vector<4x256xbf16>
    %69 = arith.mulf %66, %68 : vector<4x256xbf16>
    %c8 = arith.constant 8 : index
    %c0_32 = arith.constant 0 : index
    %c0_33 = arith.constant 0 : index
    %70 = vector.load %arg4[%c8, %c0_32, %c0_33] : memref<9x8x4xbf16, #tpu.memory_space<vmem>>, vector<1x8x4xbf16>
    %71 = vector.shape_cast %70 : vector<1x8x4xbf16> to vector<8x4xbf16>
    %cst_34 = arith.constant dense<0.000000e+00> : vector<8x256xf32>
    %72 = tpu.matmul %71, %69, %cst_34 {dimension_numbers = #tpu.dot_dimension_numbers<[1], [0], [0], [1], [0, 0, 1, 1], [], []>} : vector<8x4xbf16>, vector<4x256xbf16>, vector<8x256xf32> -> vector<8x256xf32>
    %73 = arith.addf %65, %72 : vector<8x256xf32>
    %c0_35 = arith.constant 0 : index
    %c0_36 = arith.constant 0 : index
    %74 = vector.load %arg5[%c0_35, %c0_36] : memref<8x1xf32, #tpu.memory_space<vmem>>, vector<8x1xf32>
    %75 = vector.broadcast %74 : vector<8x1xf32> to vector<8x256xf32>
    %76 = arith.addf %73, %75 : vector<8x256xf32>
    %77 = vector.extract_strided_slice %76 {offsets = [0, 0], sizes = [4, 256], strides = [1, 1]} : vector<8x256xf32> to vector<4x256xf32>
    %78 = vector.extract_strided_slice %76 {offsets = [4, 0], sizes = [4, 256], strides = [1, 1]} : vector<8x256xf32> to vector<4x256xf32>
    %c0_37 = arith.constant 0 : index
    %c0_38 = arith.constant 0 : index
    %79 = vector.load %arg7[%c0_37, %c0_38] : memref<4x1xf32, #tpu.memory_space<vmem>>, vector<4x1xf32>
    %80 = vector.broadcast %79 : vector<4x1xf32> to vector<4x256xf32>
    %81 = arith.mulf %77, %80 : vector<4x256xf32>
    %82 = math.tanh %81 : vector<4x256xf32>
    %c0_39 = arith.constant 0 : index
    %c0_40 = arith.constant 0 : index
    %83 = vector.load %arg6[%c0_39, %c0_40] : memref<4x1xf32, #tpu.memory_space<vmem>>, vector<4x1xf32>
    %84 = vector.broadcast %83 : vector<4x1xf32> to vector<4x256xf32>
    %85 = arith.mulf %82, %84 : vector<4x256xf32>
    %86 = arith.mulf %85, %3 : vector<4x256xf32>
    %87 = arith.mulf %78, %3 : vector<4x256xf32>
    %88 = arith.addf %7, %87 : vector<4x256xf32>
    %89 = math.exp %86 : vector<4x256xf32>
    %90 = arith.mulf %88, %89 : vector<4x256xf32>
    %c0_41 = arith.constant 0 : index
    %c0_42 = arith.constant 0 : index
    %c0_43 = arith.constant 0 : index
    %91 = vector.load %arg8[%c0_41, %c0_42, %c0_43] : memref<2x4x256xf32, #tpu.memory_space<vmem>>, vector<1x4x256xf32>
    %92 = vector.shape_cast %91 : vector<1x4x256xf32> to vector<4x256xf32>
    %93 = vector.shape_cast %90 : vector<4x256xf32> to vector<1x4x256xf32>
    tpu.vector_store %arg8[%c0_41, %c0_42, %c0_43], %93 {strides = array<i32>} : memref<2x4x256xf32, #tpu.memory_space<vmem>>, vector<1x4x256xf32>,
    %cst_44 = arith.constant dense<0.000000e+00> : vector<4xf32>
    %94 = vector.multi_reduction <add>, %86, %cst_44 [1] : vector<4x256xf32> to vector<4xf32>
    %95 = vector.shape_cast %94 : vector<4xf32> to vector<4x1xf32>
    %cst_45 = arith.constant dense<0.000000e+00> : vector<1xf32>
    %96 = vector.multi_reduction <add>, %95, %cst_45 [0] : vector<4x1xf32> to vector<1xf32>
    %97 = vector.shape_cast %96 : vector<1xf32> to vector<1x1xf32>
    %cst_46 = arith.constant 1.000000e+00 : f32
    %98 = vector.broadcast %cst_46 : f32 to vector<1x1xf32>
    %99 = arith.mulf %98, %97 : vector<1x1xf32>
    %c0_47 = arith.constant 0 : index
    %c0_48 = arith.constant 0 : index
    %c0_49 = arith.constant 0 : index
    %100 = vector.load %arg9[%c0_47, %c0_48, %c0_49] : memref<2x1x1xf32, #tpu.memory_space<vmem>>, vector<1x1x1xf32>
    %101 = vector.shape_cast %100 : vector<1x1x1xf32> to vector<1x1xf32>
    %102 = vector.shape_cast %99 : vector<1x1xf32> to vector<1x1x1xf32>
    tpu.vector_store %arg9[%c0_47, %c0_48, %c0_49], %102 {strides = array<i32>} : memref<2x1x1xf32, #tpu.memory_space<vmem>>, vector<1x1x1xf32>,
    %c1_50 = arith.constant 1 : index
    %c0_51 = arith.constant 0 : index
    %c0_52 = arith.constant 0 : index
    %103 = vector.load %arg1[%c1_50, %c0_51, %c0_52] : memref<2x4x290xf32, #tpu.memory_space<vmem>>, vector<1x4x290xf32>
    %104 = vector.shape_cast %103 : vector<1x4x290xf32> to vector<4x290xf32>
    %105 = vector.extract_strided_slice %104 {offsets = [0, 17], sizes = [4, 256], strides = [1, 1]} : vector<4x290xf32> to vector<4x256xf32>
    %106 = arith.mulf %104, %0 : vector<4x290xf32>
    %107 = arith.truncf %106 : vector<4x290xf32> to vector<4x290xbf16>
    %cst_53 = arith.constant 0.000000e+00 : f32
    %108 = vector.broadcast %cst_53 : f32 to vector<8x256xf32>
    %109 = vector.extract_strided_slice %107 {offsets = [0, 0], sizes = [4, 256], strides = [1, 1]} : vector<4x290xbf16> to vector<4x256xbf16>
    %110 = vector.extract_strided_slice %4 {offsets = [0, 0], sizes = [1, 256], strides = [1, 1]} : vector<2x256xbf16> to vector<1x256xbf16>
    %111 = vector.broadcast %110 : vector<1x256xbf16> to vector<4x256xbf16>
    %112 = arith.mulf %109, %111 : vector<4x256xbf16>
    %c0_54 = arith.constant 0 : index
    %c0_55 = arith.constant 0 : index
    %c0_56 = arith.constant 0 : index
    %113 = vector.load %arg4[%c0_54, %c0_55, %c0_56] : memref<9x8x4xbf16, #tpu.memory_space<vmem>>, vector<1x8x4xbf16>
    %114 = vector.shape_cast %113 : vector<1x8x4xbf16> to vector<8x4xbf16>
    %cst_57 = arith.constant dense<0.000000e+00> : vector<8x256xf32>
    %115 = tpu.matmul %114, %112, %cst_57 {dimension_numbers = #tpu.dot_dimension_numbers<[1], [0], [0], [1], [0, 0, 1, 1], [], []>} : vector<8x4xbf16>, vector<4x256xbf16>, vector<8x256xf32> -> vector<8x256xf32>
    %116 = arith.addf %108, %115 : vector<8x256xf32>
    %117 = vector.extract_strided_slice %107 {offsets = [0, 1], sizes = [4, 256], strides = [1, 1]} : vector<4x290xbf16> to vector<4x256xbf16>
    %c1_58 = arith.constant 1 : index
    %c0_59 = arith.constant 0 : index
    %c0_60 = arith.constant 0 : index
    %118 = vector.load %arg4[%c1_58, %c0_59, %c0_60] : memref<9x8x4xbf16, #tpu.memory_space<vmem>>, vector<1x8x4xbf16>
    %119 = vector.shape_cast %118 : vector<1x8x4xbf16> to vector<8x4xbf16>
    %cst_61 = arith.constant dense<0.000000e+00> : vector<8x256xf32>
    %120 = tpu.matmul %119, %117, %cst_61 {dimension_numbers = #tpu.dot_dimension_numbers<[1], [0], [0], [1], [0, 0, 1, 1], [], []>} : vector<8x4xbf16>, vector<4x256xbf16>, vector<8x256xf32> -> vector<8x256xf32>
    %121 = arith.addf %116, %120 : vector<8x256xf32>
    %122 = vector.extract_strided_slice %107 {offsets = [0, 2], sizes = [4, 256], strides = [1, 1]} : vector<4x290xbf16> to vector<4x256xbf16>
    %123 = vector.extract_strided_slice %4 {offsets = [1, 0], sizes = [1, 256], strides = [1, 1]} : vector<2x256xbf16> to vector<1x256xbf16>
    %124 = vector.broadcast %123 : vector<1x256xbf16> to vector<4x256xbf16>
    %125 = arith.mulf %122, %124 : vector<4x256xbf16>
    %c2_62 = arith.constant 2 : index
    %c0_63 = arith.constant 0 : index
    %c0_64 = arith.constant 0 : index
    %126 = vector.load %arg4[%c2_62, %c0_63, %c0_64] : memref<9x8x4xbf16, #tpu.memory_space<vmem>>, vector<1x8x4xbf16>
    %127 = vector.shape_cast %126 : vector<1x8x4xbf16> to vector<8x4xbf16>
    %cst_65 = arith.constant dense<0.000000e+00> : vector<8x256xf32>
    %128 = tpu.matmul %127, %125, %cst_65 {dimension_numbers = #tpu.dot_dimension_numbers<[1], [0], [0], [1], [0, 0, 1, 1], [], []>} : vector<8x4xbf16>, vector<4x256xbf16>, vector<8x256xf32> -> vector<8x256xf32>
    %129 = arith.addf %121, %128 : vector<8x256xf32>
    %130 = vector.extract_strided_slice %107 {offsets = [0, 16], sizes = [4, 256], strides = [1, 1]} : vector<4x290xbf16> to vector<4x256xbf16>
    %131 = vector.extract_strided_slice %4 {offsets = [0, 0], sizes = [1, 256], strides = [1, 1]} : vector<2x256xbf16> to vector<1x256xbf16>
    %132 = vector.broadcast %131 : vector<1x256xbf16> to vector<4x256xbf16>
    %133 = arith.mulf %130, %132 : vector<4x256xbf16>
    %c3_66 = arith.constant 3 : index
    %c0_67 = arith.constant 0 : index
    %c0_68 = arith.constant 0 : index
    %134 = vector.load %arg4[%c3_66, %c0_67, %c0_68] : memref<9x8x4xbf16, #tpu.memory_space<vmem>>, vector<1x8x4xbf16>
    %135 = vector.shape_cast %134 : vector<1x8x4xbf16> to vector<8x4xbf16>
    %cst_69 = arith.constant dense<0.000000e+00> : vector<8x256xf32>
    %136 = tpu.matmul %135, %133, %cst_69 {dimension_numbers = #tpu.dot_dimension_numbers<[1], [0], [0], [1], [0, 0, 1, 1], [], []>} : vector<8x4xbf16>, vector<4x256xbf16>, vector<8x256xf32> -> vector<8x256xf32>
    %137 = arith.addf %129, %136 : vector<8x256xf32>
    %138 = vector.extract_strided_slice %107 {offsets = [0, 17], sizes = [4, 256], strides = [1, 1]} : vector<4x290xbf16> to vector<4x256xbf16>
    %c4_70 = arith.constant 4 : index
    %c0_71 = arith.constant 0 : index
    %c0_72 = arith.constant 0 : index
    %139 = vector.load %arg4[%c4_70, %c0_71, %c0_72] : memref<9x8x4xbf16, #tpu.memory_space<vmem>>, vector<1x8x4xbf16>
    %140 = vector.shape_cast %139 : vector<1x8x4xbf16> to vector<8x4xbf16>
    %cst_73 = arith.constant dense<0.000000e+00> : vector<8x256xf32>
    %141 = tpu.matmul %140, %138, %cst_73 {dimension_numbers = #tpu.dot_dimension_numbers<[1], [0], [0], [1], [0, 0, 1, 1], [], []>} : vector<8x4xbf16>, vector<4x256xbf16>, vector<8x256xf32> -> vector<8x256xf32>
    %142 = arith.addf %137, %141 : vector<8x256xf32>
    %143 = vector.extract_strided_slice %107 {offsets = [0, 18], sizes = [4, 256], strides = [1, 1]} : vector<4x290xbf16> to vector<4x256xbf16>
    %144 = vector.extract_strided_slice %4 {offsets = [1, 0], sizes = [1, 256], strides = [1, 1]} : vector<2x256xbf16> to vector<1x256xbf16>
    %145 = vector.broadcast %144 : vector<1x256xbf16> to vector<4x256xbf16>
    %146 = arith.mulf %143, %145 : vector<4x256xbf16>
    %c5_74 = arith.constant 5 : index
    %c0_75 = arith.constant 0 : index
    %c0_76 = arith.constant 0 : index
    %147 = vector.load %arg4[%c5_74, %c0_75, %c0_76] : memref<9x8x4xbf16, #tpu.memory_space<vmem>>, vector<1x8x4xbf16>
    %148 = vector.shape_cast %147 : vector<1x8x4xbf16> to vector<8x4xbf16>
    %cst_77 = arith.constant dense<0.000000e+00> : vector<8x256xf32>
    %149 = tpu.matmul %148, %146, %cst_77 {dimension_numbers = #tpu.dot_dimension_numbers<[1], [0], [0], [1], [0, 0, 1, 1], [], []>} : vector<8x4xbf16>, vector<4x256xbf16>, vector<8x256xf32> -> vector<8x256xf32>
    %150 = arith.addf %142, %149 : vector<8x256xf32>
    %151 = vector.extract_strided_slice %107 {offsets = [0, 32], sizes = [4, 256], strides = [1, 1]} : vector<4x290xbf16> to vector<4x256xbf16>
    %152 = vector.extract_strided_slice %4 {offsets = [0, 0], sizes = [1, 256], strides = [1, 1]} : vector<2x256xbf16> to vector<1x256xbf16>
    %153 = vector.broadcast %152 : vector<1x256xbf16> to vector<4x256xbf16>
    %154 = arith.mulf %151, %153 : vector<4x256xbf16>
    %c6_78 = arith.constant 6 : index
    %c0_79 = arith.constant 0 : index
    %c0_80 = arith.constant 0 : index
    %155 = vector.load %arg4[%c6_78, %c0_79, %c0_80] : memref<9x8x4xbf16, #tpu.memory_space<vmem>>, vector<1x8x4xbf16>
    %156 = vector.shape_cast %155 : vector<1x8x4xbf16> to vector<8x4xbf16>
    %cst_81 = arith.constant dense<0.000000e+00> : vector<8x256xf32>
    %157 = tpu.matmul %156, %154, %cst_81 {dimension_numbers = #tpu.dot_dimension_numbers<[1], [0], [0], [1], [0, 0, 1, 1], [], []>} : vector<8x4xbf16>, vector<4x256xbf16>, vector<8x256xf32> -> vector<8x256xf32>
    %158 = arith.addf %150, %157 : vector<8x256xf32>
    %159 = vector.extract_strided_slice %107 {offsets = [0, 33], sizes = [4, 256], strides = [1, 1]} : vector<4x290xbf16> to vector<4x256xbf16>
    %c7_82 = arith.constant 7 : index
    %c0_83 = arith.constant 0 : index
    %c0_84 = arith.constant 0 : index
    %160 = vector.load %arg4[%c7_82, %c0_83, %c0_84] : memref<9x8x4xbf16, #tpu.memory_space<vmem>>, vector<1x8x4xbf16>
    %161 = vector.shape_cast %160 : vector<1x8x4xbf16> to vector<8x4xbf16>
    %cst_85 = arith.constant dense<0.000000e+00> : vector<8x256xf32>
    %162 = tpu.matmul %161, %159, %cst_85 {dimension_numbers = #tpu.dot_dimension_numbers<[1], [0], [0], [1], [0, 0, 1, 1], [], []>} : vector<8x4xbf16>, vector<4x256xbf16>, vector<8x256xf32> -> vector<8x256xf32>
    %163 = arith.addf %158, %162 : vector<8x256xf32>
    %164 = vector.extract_strided_slice %107 {offsets = [0, 34], sizes = [4, 256], strides = [1, 1]} : vector<4x290xbf16> to vector<4x256xbf16>
    %165 = vector.extract_strided_slice %4 {offsets = [1, 0], sizes = [1, 256], strides = [1, 1]} : vector<2x256xbf16> to vector<1x256xbf16>
    %166 = vector.broadcast %165 : vector<1x256xbf16> to vector<4x256xbf16>
    %167 = arith.mulf %164, %166 : vector<4x256xbf16>
    %c8_86 = arith.constant 8 : index
    %c0_87 = arith.constant 0 : index
    %c0_88 = arith.constant 0 : index
    %168 = vector.load %arg4[%c8_86, %c0_87, %c0_88] : memref<9x8x4xbf16, #tpu.memory_space<vmem>>, vector<1x8x4xbf16>
    %169 = vector.shape_cast %168 : vector<1x8x4xbf16> to vector<8x4xbf16>
    %cst_89 = arith.constant dense<0.000000e+00> : vector<8x256xf32>
    %170 = tpu.matmul %169, %167, %cst_89 {dimension_numbers = #tpu.dot_dimension_numbers<[1], [0], [0], [1], [0, 0, 1, 1], [], []>} : vector<8x4xbf16>, vector<4x256xbf16>, vector<8x256xf32> -> vector<8x256xf32>
    %171 = arith.addf %163, %170 : vector<8x256xf32>
    %c0_90 = arith.constant 0 : index
    %c0_91 = arith.constant 0 : index
    %172 = vector.load %arg5[%c0_90, %c0_91] : memref<8x1xf32, #tpu.memory_space<vmem>>, vector<8x1xf32>
    %173 = vector.broadcast %172 : vector<8x1xf32> to vector<8x256xf32>
    %174 = arith.addf %171, %173 : vector<8x256xf32>
    %175 = vector.extract_strided_slice %174 {offsets = [0, 0], sizes = [4, 256], strides = [1, 1]} : vector<8x256xf32> to vector<4x256xf32>
    %176 = vector.extract_strided_slice %174 {offsets = [4, 0], sizes = [4, 256], strides = [1, 1]} : vector<8x256xf32> to vector<4x256xf32>
    %c0_92 = arith.constant 0 : index
    %c0_93 = arith.constant 0 : index
    %177 = vector.load %arg7[%c0_92, %c0_93] : memref<4x1xf32, #tpu.memory_space<vmem>>, vector<4x1xf32>
    %178 = vector.broadcast %177 : vector<4x1xf32> to vector<4x256xf32>
    %179 = arith.mulf %175, %178 : vector<4x256xf32>
    %180 = math.tanh %179 : vector<4x256xf32>
    %c0_94 = arith.constant 0 : index
    %c0_95 = arith.constant 0 : index
    %181 = vector.load %arg6[%c0_94, %c0_95] : memref<4x1xf32, #tpu.memory_space<vmem>>, vector<4x1xf32>
    %182 = vector.broadcast %181 : vector<4x1xf32> to vector<4x256xf32>
    %183 = arith.mulf %180, %182 : vector<4x256xf32>
    %184 = arith.mulf %183, %3 : vector<4x256xf32>
    %185 = arith.mulf %176, %3 : vector<4x256xf32>
    %186 = arith.addf %105, %185 : vector<4x256xf32>
    %187 = math.exp %184 : vector<4x256xf32>
    %188 = arith.mulf %186, %187 : vector<4x256xf32>
    %c1_96 = arith.constant 1 : index
    %c0_97 = arith.constant 0 : index
    %c0_98 = arith.constant 0 : index
    %189 = vector.load %arg8[%c1_96, %c0_97, %c0_98] : memref<2x4x256xf32, #tpu.memory_space<vmem>>, vector<1x4x256xf32>
    %190 = vector.shape_cast %189 : vector<1x4x256xf32> to vector<4x256xf32>
    %191 = vector.shape_cast %188 : vector<4x256xf32> to vector<1x4x256xf32>
    tpu.vector_store %arg8[%c1_96, %c0_97, %c0_98], %191 {strides = array<i32>} : memref<2x4x256xf32, #tpu.memory_space<vmem>>, vector<1x4x256xf32>,
    %cst_99 = arith.constant dense<0.000000e+00> : vector<4xf32>
    %192 = vector.multi_reduction <add>, %184, %cst_99 [1] : vector<4x256xf32> to vector<4xf32>
    %193 = vector.shape_cast %192 : vector<4xf32> to vector<4x1xf32>
    %cst_100 = arith.constant dense<0.000000e+00> : vector<1xf32>
    %194 = vector.multi_reduction <add>, %193, %cst_100 [0] : vector<4x1xf32> to vector<1xf32>
    %195 = vector.shape_cast %194 : vector<1xf32> to vector<1x1xf32>
    %cst_101 = arith.constant 1.000000e+00 : f32
    %196 = vector.broadcast %cst_101 : f32 to vector<1x1xf32>
    %197 = arith.mulf %196, %195 : vector<1x1xf32>
    %c1_102 = arith.constant 1 : index
    %c0_103 = arith.constant 0 : index
    %c0_104 = arith.constant 0 : index
    %198 = vector.load %arg9[%c1_102, %c0_103, %c0_104] : memref<2x1x1xf32, #tpu.memory_space<vmem>>, vector<1x1x1xf32>
    %199 = vector.shape_cast %198 : vector<1x1x1xf32> to vector<1x1xf32>
    %200 = vector.shape_cast %197 : vector<1x1xf32> to vector<1x1x1xf32>
    tpu.vector_store %arg9[%c1_102, %c0_103, %c0_104], %200 {strides = array<i32>} : memref<2x1x1xf32, #tpu.memory_space<vmem>>, vector<1x1x1xf32>,
    return
  }
  func.func @transform_0(%arg0: i32) -> (i32, i32, i32) {
    %c0_i32 = arith.constant 0 : i32
    %c0_i32_0 = arith.constant 0 : i32
    %c0_i32_1 = arith.constant 0 : i32
    return %arg0, %c0_i32, %c0_i32_0 : i32, i32, i32
  }
  func.func @transform_1(%arg0: i32) -> (i32, i32) {
    %c0_i32 = arith.constant 0 : i32
    %c0_i32_0 = arith.constant 0 : i32
    %c0_i32_1 = arith.constant 0 : i32
    return %c0_i32, %c0_i32_0 : i32, i32
  }
  func.func @transform_2(%arg0: i32) -> (i32, i32) {
    %c0_i32 = arith.constant 0 : i32
    %c0_i32_0 = arith.constant 0 : i32
    %c0_i32_1 = arith.constant 0 : i32
    return %c0_i32, %c0_i32_0 : i32, i32
  }
  func.func @transform_3(%arg0: i32) -> (i32, i32, i32) {
    %c0_i32 = arith.constant 0 : i32
    %c0_i32_0 = arith.constant 0 : i32
    %c0_i32_1 = arith.constant 0 : i32
    %c0_i32_2 = arith.constant 0 : i32
    return %c0_i32, %c0_i32_0, %c0_i32_1 : i32, i32, i32
  }
  func.func @transform_4(%arg0: i32) -> (i32, i32) {
    %c0_i32 = arith.constant 0 : i32
    %c0_i32_0 = arith.constant 0 : i32
    %c0_i32_1 = arith.constant 0 : i32
    return %c0_i32, %c0_i32_0 : i32, i32
  }
  func.func @transform_5(%arg0: i32) -> (i32, i32) {
    %c0_i32 = arith.constant 0 : i32
    %c0_i32_0 = arith.constant 0 : i32
    %c0_i32_1 = arith.constant 0 : i32
    return %c0_i32, %c0_i32_0 : i32, i32
  }
  func.func @transform_6(%arg0: i32) -> (i32, i32) {
    %c0_i32 = arith.constant 0 : i32
    %c0_i32_0 = arith.constant 0 : i32
    %c0_i32_1 = arith.constant 0 : i32
    return %c0_i32, %c0_i32_0 : i32, i32
  }
  func.func @transform_7(%arg0: i32) -> (i32, i32, i32) {
    %c0_i32 = arith.constant 0 : i32
    %c0_i32_0 = arith.constant 0 : i32
    %c0_i32_1 = arith.constant 0 : i32
    return %arg0, %c0_i32, %c0_i32_0 : i32, i32, i32
  }
  func.func @transform_8(%arg0: i32) -> (i32, i32, i32) {
    %c0_i32 = arith.constant 0 : i32
    %c0_i32_0 = arith.constant 0 : i32
    %c0_i32_1 = arith.constant 0 : i32
    return %arg0, %c0_i32, %c0_i32_0 : i32, i32, i32
  }
}

</mosaic_0001>

<bundles_post_ra>
// kernel: coupling_forward.1
= control target key start
LH: loop header
LB: loop body
LE: loop exit
PB: predicated region body
PF: predicated region fallthrough
CT: control target
= control target key end

     0   :  { %v56_v0 = vlaneseq  ;;  %v1609_v1 = vmov 1966171168   ;;  %s1610_s29 = smov 16   ;;  %s1612_s12 = smov 18   ;;  %vm102_vm0 = vcmask 1041408   ;;  %vm519_vm1 = vcmask 261120   ;;  %s2137_s2 = inlined_call_operand.vmem [shape: bf16[2,256], index: 2, kind: input, shape index: {}]   ;;  %s2138_s0 = inlined_call_operand.vmem [shape: f32[2,4,290], index: 0, kind: input, shape index: {}]   ;;  %s2139_s1 = inlined_call_operand.vmem [shape: f32[4,290], index: 1, kind: input, shape index: {}]   ;;  %s2140_s3 = inlined_call_operand.vmem [shape: bf16[9,8,4], index: 3, kind: input, shape index: {}]   ;;  %s2141_s4 = inlined_call_operand.vmem [shape: f32[8,1], index: 4, kind: input, shape index: {}]   ;;  %s2142_s6 = inlined_call_operand.vmem [shape: f32[4,1], index: 6, kind: input, shape index: {}]   ;;  %s2143_s5 = inlined_call_operand.vmem [shape: f32[4,1], index: 5, kind: input, shape index: {}]   ;;  %s2144_s8 = inlined_call_operand.vmem [shape: f32[2,1,1], index: 8, kind: output, shape index: {1}]   ;;  %s2145_s7 = inlined_call_operand.vmem [shape: f32[2,4,256], index: 7, kind: output, shape index: {0}]  }
   0x1   :  { %v54_v2 = vunpack.c.l.s4 %v1609_v1  ;;  %v1516_v3 = vld.sshfl [vmem:[%s2137_s2] sm:$0x11 pattern:$0x75316420]  ;;  %s1611_s2 = smov 2   ;;  %s1613_s13 = smov 32  }
   0x2   :  { %v57_v4 = vshrl.u32 %v56_v0, 7  ;;  %v52_v6 = vcombine.high %v1516_v3, %v1516_v3  ;;  %v1682_v21 = vld [vmem:[%s2139_s1] sm:$0xff]  ;;  %v1693_v25 = vld [vmem:[%s2139_s1 + $0x8] sm:$0xf]  ;;  %s1614_s18 = smov 34   ;;  %s1615_s19 = smov 127  }
   0x3   :  { %v55_v5 = vunpack.c.0.s8 %v54_v2  ;;  %v34_v22 = vld [vmem:[%s2138_s0] sm:$0xff]  ;;  %v35_v26 = vld [vmem:[%s2138_s0 + $0x8] sm:$0xf]  ;;  %s1616_s1 = smov 111   ;;  %s1617_s20 = smov 112   ;;  %v1618_v43 = vmov 0  }
   0x4   :  { %v72_v9 = vsub.s32 0, %v57_v4  ;;  %v36_v23 = vmul.f32 %v34_v22, %v1682_v21  ;;  %v37_v29 = vmul.f32 %v35_v26, %v1693_v25  ;;  %191 = vmatprep.mubr.bf16.mxu1 %v1618_v43  ;;  %v83_v44 = vld [vmem:[%s2140_s3] sm:$0xf]  ;;  %vm98_vm2 = vcmask 31744   ;;  %141 = vmatprep.mubr.bf16.mxu0 %v1618_v43  ;;  %s1619_s23 = smov 96   ;;  %s1620_s24 = smov 110  }
   0x5   :  { %v58_v7 = vsub.s32 %v55_v5, %v57_v4  ;;  %1590 = vset.pattern.permute.xlu1 %v1618_v43  ;;  %1589 = vset.pattern.permute.xlu0 %v1618_v43  ;;  %vm300_vm3 = vcmask 130048   ;;  %vm95_vm4 = vcmask 1039360   ;;  %vm220_vm5 = vcmask 15360   ;;  %s1621_s25 = smov 126   ;;  %v1517_v1 = vld [vmem:[%s2140_s3 + $0x4] sm:$0xf] }
   0x6   :  { %v39_v24 = vcombine.high %v36_v23, %v36_v23  ;;  %v1700_v28 = vpack.c.bf16 %v36_v23, %v36_v23  ;;  %v1707_v30 = vpack.c.bf16 %v37_v29, %v37_v29  ;;  %v1815_v5 = vld [vmem:[%s2138_s0 + $0x14] sm:$0xf]  ;;  %vm441_vm6 = vcmask 146432   ;;  %s1623_s10 = smov 94  }
   0x7   :  { %v59_v8 = vrot.slane %v1516_v3, %v58_v7  ;;  %v66_v10 = vrot.slane %v52_v6, %v58_v7  ;;  %v1804_v3 = vld [vmem:[%s2138_s0 + $0xc] sm:$0xff]  ;;  %vm660_vm7 = vcmask 277504   ;;  %vm319_vm8 = vcmask 916480  }
   0x8   :  { %v1698_v27 = vpack.c.bf16 %v39_v24, %v39_v24  ;;  %v845_v4 = vmul.f32 %v1804_v3, %v1682_v21  ;;  %vm239_vm9 = vcmask 1031168   ;;  %vm382_vm10 = vcmask 908288  }
   0x9   :  { %v200_v11 = vshrl.u32 %v59_v8, 16  ;;  %v68_v12 = vpack.i.b16 %v59_v8, %v59_v8  ;;  %v207_v13 = vshrl.u32 %v66_v10, 16  ;;  %v75_v14 = vpack.i.b16 %v66_v10, %v66_v10 }
   0xa   :  { %v1823_v7 = vpack.c.bf16 %v845_v4, %v845_v4  ;;  %v846_v8 = vmul.f32 %v1815_v5, %v1693_v25  ;;  %vm538_vm11 = vcmask 785408   ;;  %vm460_vm12 = vcmask 900096  }
   0xb   :  { %v201_v15 = vpack.i.b16 %v200_v11, %v200_v11  ;;  %v1673_v16 = vrot.slane %v68_v12, %v72_v9  ;;  %v208_v17 = vpack.i.b16 %v207_v13, %v207_v13  ;;  %v1676_v19 = vrot.slane %v75_v14, %v72_v9 }
   0xc   :  { %v852_v10 = vpack.c.bf16 %v846_v8, %v846_v8  ;;  %v848_v13 = vcombine.high %v845_v4, %v845_v4  ;;  %v1522_v8 = vld [vmem:[%s2140_s3 + $0x8] sm:$0xf]  ;;  %vm601_vm13 = vcmask 777216   ;;  %vm679_vm14 = vcmask 769024  }
   0xd   :  { %v206_v18 = vrot.slane %v201_v15, %v72_v9  ;;  %296 = vrot.lane.b32.xlu1 %v1673_v16, %s1610_s29  ;;  %v213_v20 = vrot.slane %v208_v17, %v72_v9  ;;  %v82_v37 = vmul.bf16 %v1676_v19, %v1698_v27  ;;  %v81_v39 = vmul.bf16 %v1673_v16, %v1700_v28 }
   0xe   :  { %v1843_v17 = vpack.c.bf16 %v848_v13, %v848_v13  ;;  %vm823_vm15 = vcmask 1043456  }
   0xf   :  { %216 = vrot.lane.b32.xlu0 %v206_v18, %s1611_s2  ;;  %1520 = vmatprep.subr.msk.bf16.mxu1 %vm102_vm0, %v82_v37  ;;  %v154_v41 = vsel %vm102_vm0, %v81_v39, 0  ;;  %v1433_v37 = vld [vmem:[%s2142_s6] sm:$0xf] }
  0x10   :  { %174 = vmatpush1.bf16.msra.mxu1 %v154_v41  ;;  %v1443_v39 = vld [vmem:[%s2143_s5] sm:$0xf] }
  0x11   :  { %298 = vrot.lane.b32.xlu1 %v1676_v19, %s1610_s29 }
  0x13   :  { %218 = vrot.lane.b32.xlu0 %v213_v20, %s1611_s2  ;;  %1521 = vmatmul.mubr.msk.bf16.vlgmr.msra.gmra.mxu1 %vm98_vm2, %v83_v44  ;;  %s1622_s2 = smov 95  }
  0x14   :  { %363 = vmatprep.mubr.bf16.mxu1 %v1618_v43 }
  0x15   :  { %439 = vrot.lane.b32.xlu1 %v213_v20, %s1612_s12 }
  0x17   :  { %437 = vrot.lane.b32.xlu0 %v206_v18, %s1612_s12 }
  0x19   :  { %517 = vrot.lane.b32.xlu1 %v1676_v19, %s1613_s13 }
  0x1b   :  { %515 = vrot.lane.b32.xlu0 %v1673_v16, %s1613_s13 }
  0x1d   :  { %658 = vrot.lane.b32.xlu1 %v213_v20, %s1614_s18 }
  0x1f   :  { %656 = vrot.lane.b32.xlu0 %v206_v18, %s1614_s18 }
  0x21   :  { %91 = vrot.lane.b32.xlu1 %v1698_v27, %s1615_s19 }
  0x23   :  { %89 = vrot.lane.b32.xlu0 %v1700_v28, %s1615_s19 }
  0x25   :  { %376 = vrot.lane.b32.xlu1 %v1700_v28, %s1616_s1 }
  0x27   :  { %93 = vrot.lane.b32.xlu0 %v1707_v30, %s1615_s19 }
  0x29   :  { %380 = vrot.lane.b32.xlu1 %v1707_v30, %s1616_s1 }
  0x2b   :  { %378 = vrot.lane.b32.xlu0 %v1698_v27, %s1616_s1 }
  0x7f   :  { %v1717_v31 = vpop.permute.xlu1 %296 }
  0x80   :  { %v305_v32 = vmul.bf16 %v1717_v31, %v1700_v28  ;;  %v1035_v14 = vmul.bf16 %v1823_v7, %v1717_v31 }
  0x81   :  { %v1721_v33 = vpop.permute.xlu0 %216 }
  0x82   :  { %313 = vrot.lane.b32.xlu0 %v305_v32, %s1617_s20  ;;  %v225_v62 = vmul.bf16 %v1721_v33, %v1700_v28  ;;  %v968_v20 = vmul.bf16 %v1823_v7, %v1721_v33 }
  0x83   :  { %v1724_v34 = vpop.permute.xlu1 %298 }
  0x84   :  { %v307_v35 = vmul.bf16 %v1724_v34, %v1707_v30  ;;  %v1772_v52 = vsel %vm300_vm3, %v1717_v31, %v1724_v34  ;;  %v1037_v22 = vmul.bf16 %v852_v10, %v1724_v34 }
  0x85   :  { %v1728_v36 = vpop.permute.xlu0 %218  ;;  %v306_v56 = vmul.bf16 %v1772_v52, %v1698_v27  ;;  %v1036_v24 = vmul.bf16 %v1843_v17, %v1772_v52 }
  0x86   :  { %317 = vrot.lane.b32.xlu0 %v307_v35, %s1617_s20  ;;  %v221_v59 = vsel %vm220_vm5, %v1721_v33, %v1728_v36  ;;  %v227_v2 = vmul.bf16 %v1728_v36, %v1707_v30  ;;  %v970_v23 = vmul.bf16 %v852_v10, %v1728_v36  ;;  %v1425_v35 = vld [vmem:[%s2141_s4] sm:$0xff] }
  0x87   :  { %v1733_v38 = vpop.permute.xlu1 %439  ;;  %v226_v0 = vmul.bf16 %v221_v59, %v1698_v27  ;;  %v969_v26 = vmul.bf16 %v1843_v17, %v221_v59  ;;  %v1525_v59 = vld [vmem:[%s2140_s3 + $0xc] sm:$0xf] }
  0x88   :  { %v448_v58 = vmul.bf16 %v1733_v38, %v1707_v30 }
  0x89   :  { %v1738_v40 = vpop.permute.xlu0 %437 }
  0x8a   :  { %v446_v53 = vmul.bf16 %v1738_v40, %v1700_v28  ;;  %v442_v11 = vsel %vm441_vm6, %v1738_v40, %v1733_v38 }
  0x8b   :  { %v1741_v42 = vpop.permute.xlu1 %517  ;;  %v447_v12 = vmul.bf16 %v442_v11, %v1698_v27  ;;  %v1164_v32 = vmul.bf16 %v1843_v17, %v442_v11 }
  0x8c   :  { %v526_v50 = vmul.bf16 %v1741_v42, %v1707_v30  ;;  %v1232_v31 = vmul.bf16 %v852_v10, %v1741_v42 }
  0x8d   :  { %v1748_v45 = vpop.permute.xlu0 %515 }
  0x8e   :  { %v524_v46 = vmul.bf16 %v1748_v45, %v1700_v28  ;;  %v1756_v47 = vsel %vm519_vm1, %v1748_v45, %v1741_v42  ;;  %v1230_v29 = vmul.bf16 %v1823_v7, %v1748_v45  ;;  %v752_v42 = vld [vmem:[%s2143_s5] sm:$0xf]  ;;  %vm840_vm1 = vcmask 0  }
  0x8f   :  { %v525_v48 = vmul.bf16 %v1756_v47, %v1698_v27  ;;  %v1762_v49 = vpop.permute.xlu1 %658 }
  0x90   :  { %532 = vrot.lane.b32.xlu1 %v524_v46, %s1619_s23  ;;  %v667_v9 = vmul.bf16 %v1762_v49, %v1707_v30  ;;  %v1360_v36 = vmul.bf16 %v852_v10, %v1762_v49 }
  0x91   :  { %534 = vrot.lane.b32.xlu0 %v525_v48, %s1619_s23  ;;  %v1768_v51 = vpop.permute.xlu0 %656 }
  0x92   :  { %v665_v6 = vmul.bf16 %v1768_v51, %v1700_v28  ;;  %v661_v15 = vsel %vm660_vm7, %v1768_v51, %v1762_v49  ;;  %v1358_v34 = vmul.bf16 %v1823_v7, %v1768_v51 }
  0x93   :  { %v92_v54 = vpop.permute.xlu1 %91  ;;  %v666_v18 = vmul.bf16 %v661_v15, %v1698_v27  ;;  %v1359_v33 = vmul.bf16 %v1843_v17, %v661_v15 }
  0x94   :  { %536 = vrot.lane.b32.xlu1 %v526_v50, %s1619_s23 }
  0x95   :  { %454 = vrot.lane.b32.xlu0 %v446_v53, %s1620_s24  ;;  %v90_v55 = vpop.permute.xlu0 %89 }
  0x96   :  { %v96_v57 = vsel %vm95_vm4, %v90_v55, %v92_v54 }
  0x97   :  { %v104_v61 = vsel %vm102_vm0, %v96_v57, 0 }
  0x98   :  { %315 = vrot.lane.b32.xlu1 %v306_v56, %s1617_s20 }
  0x99   :  { %458 = vrot.lane.b32.xlu0 %v448_v58, %s1620_s24  ;;  %v94_v60 = vpop.permute.xlu0 %93 }
  0x9a   :  { %v97_v63 = vsel %vm95_vm4, %v92_v54, %v94_v60 }
  0x9b   :  { %1518 = vmatprep.subr.msk.bf16.mxu0 %vm102_vm0, %v97_v63 }
  0x9c   :  { %233 = vrot.lane.b32.xlu1 %v225_v62, %s1621_s25  ;;  %124 = vmatpush1.bf16.msra.mxu0 %v104_v61 }
  0x9d   :  { %235 = vrot.lane.b32.xlu0 %v226_v0, %s1621_s25  ;;  %v379_v45 = vpop.permute.xlu0 %378 }
  0x9f   :  { %1519 = vmatmul.mubr.msk.bf16.vlgmr.msra.gmra.mxu0 %vm98_vm2, %v1517_v1 }
  0xa0   :  { %237 = vrot.lane.b32.xlu1 %v227_v2, %s1621_s25  ;;  %283 = vmatprep.mubr.bf16.mxu0 %v1618_v43 }
  0xa1   :  { %595 = vrot.lane.b32.xlu0 %v1700_v28, %s1622_s2  ;;  %v1165_v28 = vmul.bf16 %v852_v10, %v1733_v38  ;;  %v31_v38 = vsub.f32 1.0, %v1682_v21  ;;  %v32_v21 = vsub.f32 1.0, %v1693_v25 }
  0xa3   :  { %v762_v41 = vcombine.high %v31_v38, %v31_v38  ;;  %v776_v44 = vcombine.low %v31_v38, %v31_v38  ;;  %v777_v46 = vcombine.low %v32_v21, %v32_v21 }
  0xa4   :  { %597 = vrot.lane.b32.xlu1 %v1698_v27, %s1622_s2  ;;  %v1163_v27 = vmul.bf16 %v1823_v7, %v1738_v40  ;;  %v742_v40 = vld [vmem:[%s2142_s6] sm:$0xf] }
  0xa5   :  { %599 = vrot.lane.b32.xlu0 %v1707_v30, %s1622_s2  ;;  %v1231_v30 = vmul.bf16 %v1843_v17, %v1756_v47  ;;  %v377_v47 = vpop.permute.xlu1 %376 }
  0xa6   :  { %v383_v4 = vsel %vm382_vm10, %v377_v47, %v379_v45 }
  0xa7   :  { %v389_v11 = vsel %vm102_vm0, %v383_v4, 0 }
  0xa8   :  { %673 = vrot.lane.b32.xlu1 %v665_v6, %s1623_s10 }
  0xa9   :  { %860 = vrot.lane.b32.xlu0 %v1823_v7, %s1615_s19  ;;  %v381_v49 = vpop.permute.xlu1 %380 }
  0xaa   :  { %v384_v6 = vsel %vm382_vm10, %v379_v45, %v381_v49  ;;  %v1540_v45 = vld [vmem:[%s2140_s3 + $0x20] sm:$0xf] }
  0xac   :  { %677 = vrot.lane.b32.xlu1 %v667_v9, %s1623_s10 }
  0xad   :  { %864 = vrot.lane.b32.xlu0 %v852_v10, %s1615_s19 }
  0xb0   :  { %456 = vrot.lane.b32.xlu1 %v447_v12, %s1620_s24 }
  0xb1   :  { %1042 = vrot.lane.b32.xlu0 %v1035_v14, %s1617_s20 }
  0xb4   :  { %862 = vrot.lane.b32.xlu1 %v1843_v17, %s1615_s19 }
  0xb5   :  { %675 = vrot.lane.b32.xlu0 %v666_v18, %s1623_s10  ;;  %v1528_v18 = vld [vmem:[%s2140_s3 + $0x10] sm:$0xf] }
  0xb8   :  { %975 = vrot.lane.b32.xlu1 %v968_v20, %s1621_s25 }
  0xb9   :  { %1046 = vrot.lane.b32.xlu0 %v1037_v22, %s1617_s20 }
  0xbc   :  { %979 = vrot.lane.b32.xlu1 %v970_v23, %s1621_s25 }
  0xbd   :  { %1105 = vrot.lane.b32.xlu0 %v1843_v17, %s1616_s1 }
  0xc0   :  { %1044 = vrot.lane.b32.xlu1 %v1036_v24, %s1617_s20 }
  0xc1   :  { %977 = vrot.lane.b32.xlu0 %v969_v26, %s1621_s25 }
  0xc4   :  { %1103 = vrot.lane.b32.xlu1 %v1823_v7, %s1616_s1 }
  0xc5   :  { %1170 = vrot.lane.b32.xlu0 %v1163_v27, %s1620_s24 }
  0xc8   :  { %1107 = vrot.lane.b32.xlu1 %v852_v10, %s1616_s1 }
  0xc9   :  { %1174 = vrot.lane.b32.xlu0 %v1165_v28, %s1620_s24 }
  0xcc   :  { %1237 = vrot.lane.b32.xlu1 %v1230_v29, %s1619_s23 }
  0xcd   :  { %1239 = vrot.lane.b32.xlu0 %v1231_v30, %s1619_s23 }
  0xd0   :  { %1241 = vrot.lane.b32.xlu1 %v1232_v31, %s1619_s23 }
  0xd1   :  { %1298 = vrot.lane.b32.xlu0 %v1823_v7, %s1622_s2 }
  0xd4   :  { %1172 = vrot.lane.b32.xlu1 %v1164_v32, %s1620_s24  ;;  %v1531_v32 = vld [vmem:[%s2140_s3 + $0x14] sm:$0xf] }
  0xd5   :  { %1302 = vrot.lane.b32.xlu0 %v852_v10, %s1622_s2 }
  0xd8   :  { %1300 = vrot.lane.b32.xlu1 %v1843_v17, %s1622_s2 }
  0xd9   :  { %1367 = vrot.lane.b32.xlu0 %v1359_v33, %s1623_s10  ;;  %v1534_v33 = vld [vmem:[%s2140_s3 + $0x18] sm:$0xf] }
  0xdc   :  { %1365 = vrot.lane.b32.xlu1 %v1358_v34, %s1623_s10 }
  0xdd   :  { %737 = vperm.xlu0 %1589, %v1425_v35  }
  0xe0   :  { %1369 = vrot.lane.b32.xlu1 %v1360_v36, %s1623_s10 }
  0xe1   :  { %1436 = vperm.xlu0 %1589, %v1433_v37  }
  0xe4   :  { %1428 = vperm.xlu1 %1590, %v1425_v35  }
  0xe5   :  { %1446 = vperm.xlu0 %1589, %v1443_v39   ;;  %v854_v39 = vmul.bf16 %v1843_v17, %v1676_v19  ;;  %v1537_v17 = vld [vmem:[%s2140_s3 + $0x1c] sm:$0xf] }
  0xe8   :  { %745 = vperm.xlu1 %1590, %v742_v40  }
  0xe9   :  { %765 = vrot.lane.b32.xlu0 %v762_v41, %s1616_s1 }
  0xec   :  { %755 = vperm.xlu1 %1590, %v752_v42  }
  0xed   :  { %778 = vrot.lane.b32.xlu0 %v776_v44, %s1616_s1  ;;  %v853_v44 = vmul.bf16 %v1823_v7, %v1673_v16 }
  0xef   :  { %v922_v16 = vsel %vm102_vm0, %v853_v44, 0 }
  0xf0   :  { %763 = vrot.lane.b32.xlu1 %v31_v38, %s1616_s1 }
  0xf4   :  { %767 = vrot.lane.b32.xlu1 %v32_v21, %s1616_s1  ;;  %v314_v48 = vpop.permute.xlu0 %313 }
  0xf8   :  { %780 = vrot.lane.b32.xlu1 %v777_v46, %s1616_s1  ;;  %v318_v50 = vpop.permute.xlu0 %317 }
 0x102   :  { %v533_v51 = vpop.permute.xlu1 %532 }
 0x103   :  { %v535_v52 = vpop.permute.xlu0 %534 }
 0x104   :  { %v539_v15 = vsel %vm538_vm11, %v533_v51, %v535_v52 }
 0x105   :  { %v545_v23 = vsel %vm102_vm0, %v539_v15, 0 }
 0x106   :  { %v537_v53 = vpop.permute.xlu1 %536 }
 0x107   :  { %v455_v54 = vpop.permute.xlu0 %454  ;;  %v540_v12 = vsel %vm538_vm11, %v535_v52, %v537_v53 }
 0x10a   :  { %v316_v55 = vpop.permute.xlu1 %315 }
 0x10b   :  { %v320_v56 = vsel %vm319_vm8, %v314_v48, %v316_v55  ;;  %v321_v25 = vsel %vm319_vm8, %v316_v55, %v318_v50  ;;  %v459_v57 = vpop.permute.xlu0 %458  ;;  %v855_v55 = vld [vmem:[%s2140_s3] sm:$0xf] }
 0x10c   :  { %v326_v58 = vsel %vm102_vm0, %v320_v56, 0  ;;  %1526 = vmatprep.subr.msk.bf16.mxu1 %vm102_vm0, %v321_v25 }
 0x10d   :  { %346 = vmatpush1.bf16.msra.mxu1 %v326_v58 }
 0x10e   :  { %v234_v60 = vpop.permute.xlu1 %233 }
 0x10f   :  { %v236_v61 = vpop.permute.xlu0 %235 }
 0x110   :  { %1527 = vmatmul.mubr.msk.bf16.vlgmr.msra.gmra.mxu1 %vm98_vm2, %v1525_v59  ;;  %v240_v62 = vsel %vm239_vm9, %v234_v60, %v236_v61 }
 0x111   :  { %504 = vmatprep.mubr.bf16.mxu1 %v1618_v43  ;;  %v246_v2 = vsel %vm102_vm0, %v240_v62, 0 }
 0x112   :  { %v238_v63 = vpop.permute.xlu1 %237 }
 0x113   :  { %v241_v0 = vsel %vm239_vm9, %v236_v61, %v238_v63  ;;  %v596_v1 = vpop.permute.xlu0 %595  ;;  %v1550_v63 = vld [vmem:[%s2140_s3 + $0x8] sm:$0xf] }
 0x114   :  { %1523 = vmatprep.subr.msk.bf16.mxu0 %vm102_vm0, %v241_v0  ;;  %v1553_v0 = vld [vmem:[%s2140_s3 + $0xc] sm:$0xf] }
 0x115   :  { %266 = vmatpush1.bf16.msra.mxu0 %v246_v2 }
 0x116   :  { %v598_v9 = vpop.permute.xlu1 %597  ;;  %1529 = vmatprep.subr.msk.bf16.mxu0 %vm102_vm0, %v384_v6 }
 0x117   :  { %v600_v10 = vpop.permute.xlu0 %599  ;;  %v602_v30 = vsel %vm601_vm13, %v596_v1, %v598_v9 }
 0x118   :  { %1524 = vmatmul.mubr.msk.bf16.vlgmr.msra.gmra.mxu0 %vm98_vm2, %v1522_v8  ;;  %v603_v31 = vsel %vm601_vm13, %v598_v9, %v600_v10  ;;  %v608_v36 = vsel %vm102_vm0, %v602_v30, 0 }
 0x119   :  { %409 = vmatpush1.bf16.msra.mxu0 %v389_v11  ;;  %426 = vmatprep.mubr.bf16.mxu0 %v1618_v43  ;;  %v1556_v11 = vld [vmem:[%s2140_s3 + $0x10] sm:$0xf] }
 0x11a   :  { %v674_v13 = vpop.permute.xlu1 %673  ;;  %1535 = vmatprep.subr.msk.bf16.mxu0 %vm102_vm0, %v540_v12 }
 0x11b   :  { %v861_v14 = vpop.permute.xlu0 %860 }
 0x11e   :  { %v678_v20 = vpop.permute.xlu1 %677 }
 0x11f   :  { %v865_v22 = vpop.permute.xlu0 %864 }
 0x120   :  { %1530 = vmatmul.mubr.msk.bf16.vlgmr.msra.gmra.mxu0 %vm98_vm2, %v1528_v18 }
 0x121   :  { %565 = vmatpush1.bf16.msra.mxu0 %v545_v23  ;;  %582 = vmatprep.mubr.bf16.mxu0 %v1618_v43 }
 0x122   :  { %v457_v24 = vpop.permute.xlu1 %456 }
 0x123   :  { %v461_v26 = vsel %vm460_vm12, %v455_v54, %v457_v24  ;;  %v462_v27 = vsel %vm460_vm12, %v457_v24, %v459_v57  ;;  %v1043_v28 = vpop.permute.xlu0 %1042  ;;  %v1545_v54 = vld [vmem:[%s2140_s3 + $0x4] sm:$0xf] }
 0x124   :  { %v467_v29 = vsel %vm102_vm0, %v461_v26, 0  ;;  %1532 = vmatprep.subr.msk.bf16.mxu1 %vm102_vm0, %v462_v27 }
 0x125   :  { %487 = vmatpush1.bf16.msra.mxu1 %v467_v29  ;;  %v193_v29 = vpop.f32.mrf.mxu1 }
 0x126   :  { %v863_v34 = vpop.permute.xlu1 %862  ;;  %1538 = vmatprep.subr.msk.bf16.mxu1 %vm102_vm0, %v603_v31 }
 0x127   :  { %v676_v35 = vpop.permute.xlu0 %675  ;;  %v867_v40 = vsel %vm95_vm4, %v863_v34, %v865_v22  ;;  %v866_v19 = vsel %vm95_vm4, %v861_v14, %v863_v34  ;;  %v195_v31 = vpop.f32.mrf.mxu1  ;;  %v1565_v34 = vld [vmem:[%s2140_s3 + $0x1c] sm:$0xf] }
 0x128   :  { %v680_v37 = vsel %vm679_vm14, %v674_v13, %v676_v35  ;;  %v681_v38 = vsel %vm679_vm14, %v676_v35, %v678_v20  ;;  %1533 = vmatmul.mubr.msk.bf16.vlgmr.msra.gmra.mxu1 %vm98_vm2, %v1531_v32  ;;  %1536 = vmatmul.mubr.msk.bf16.vlgmr.msra.gmra.mxu0 %vm98_vm2, %v1534_v33  ;;  %v872_v47 = vsel %vm102_vm0, %v866_v19, 0  ;;  %v1559_v20 = vld [vmem:[%s2140_s3 + $0x14] sm:$0xf] }
 0x129   :  { %v686_v41 = vsel %vm102_vm0, %v680_v37, 0  ;;  %628 = vmatpush1.bf16.msra.mxu1 %v608_v36  ;;  %1541 = vmatprep.subr.msk.bf16.mxu0 %vm102_vm0, %v681_v38  ;;  %v197_v35 = vpop.f32.mrf.mxu1 }
 0x12a   :  { %v976_v42 = vpop.permute.xlu1 %975  ;;  %706 = vmatpush1.bf16.msra.mxu0 %v686_v41  ;;  %1546 = vmatprep.subr.msk.bf16.mxu1 %vm102_vm0, %v867_v40  ;;  %v1568_v40 = vld [vmem:[%s2140_s3 + $0x20] sm:$0xf] }
 0x12b   :  { %v1047_v21 = vpop.permute.xlu0 %1046  ;;  %723 = vmatprep.mubr.bf16.mxu0 %v1618_v43  ;;  %645 = vmatprep.mubr.bf16.mxu1 %v1618_v43  ;;  %v198_v38 = vpop.f32.mrf.mxu1 }
 0x12c   :  { %1548 = vmatprep.subr.msk.bf16.mxu0 %vm102_vm0, %v854_v39 }
 0x12e   :  { %v980_v46 = vpop.permute.xlu1 %979 }
 0x12f   :  { %v1106_v7 = vpop.permute.xlu0 %1105 }
 0x130   :  { %1539 = vmatmul.mubr.msk.bf16.vlgmr.msra.gmra.mxu1 %vm98_vm2, %v1537_v17  ;;  %1542 = vmatmul.mubr.msk.bf16.vlgmr.msra.gmra.mxu0 %vm98_vm2, %v1540_v45 }
 0x131   :  { %892 = vmatpush1.bf16.msra.mxu1 %v872_v47  ;;  %942 = vmatpush1.bf16.msra.mxu0 %v922_v16 }
 0x132   :  { %v1045_v48 = vpop.permute.xlu1 %1044  ;;  %959 = vmatprep.mubr.bf16.mxu0 %v1618_v43  ;;  %909 = vmatprep.mubr.bf16.mxu1 %v1618_v43 }
 0x133   :  { %v1049_v49 = vsel %vm319_vm8, %v1045_v48, %v1047_v21  ;;  %v978_v50 = vpop.permute.xlu0 %977  ;;  %v1048_v52 = vsel %vm319_vm8, %v1043_v28, %v1045_v48  ;;  %v1562_v28 = vld [vmem:[%s2140_s3 + $0x18] sm:$0xf]  ;;  %s1624_s3 = smov 17  }
 0x134   :  { %v982_v51 = vsel %vm239_vm9, %v978_v50, %v980_v46  ;;  %1554 = vmatprep.subr.msk.bf16.mxu0 %vm102_vm0, %v1049_v49  ;;  %v981_v53 = vsel %vm239_vm9, %v976_v42, %v978_v50  ;;  %v1054_v57 = vsel %vm102_vm0, %v1048_v52, 0 }
 0x135   :  { %1551 = vmatprep.subr.msk.bf16.mxu1 %vm102_vm0, %v982_v51  ;;  %v987_v58 = vsel %vm102_vm0, %v981_v53, 0 }
 0x136   :  { %v1104_v56 = vpop.permute.xlu1 %1103 }
 0x137   :  { %v1171_v25 = vpop.permute.xlu0 %1170  ;;  %v1109_v62 = vsel %vm382_vm10, %v1104_v56, %v1106_v7 }
 0x138   :  { %1547 = vmatmul.mubr.msk.bf16.vlgmr.msra.gmra.mxu1 %vm98_vm2, %v1545_v54  ;;  %1549 = vmatmul.mubr.msk.bf16.vlgmr.msra.gmra.mxu0 %vm98_vm2, %v855_v55  ;;  %v1115_v4 = vsel %vm102_vm0, %v1109_v62, 0 }
 0x139   :  { %1007 = vmatpush1.bf16.msra.mxu1 %v987_v58  ;;  %1074 = vmatpush1.bf16.msra.mxu0 %v1054_v57 }
 0x13a   :  { %v1108_v59 = vpop.permute.xlu1 %1107  ;;  %1024 = vmatprep.mubr.bf16.mxu1 %v1618_v43  ;;  %1091 = vmatprep.mubr.bf16.mxu0 %v1618_v43 }
 0x13b   :  { %v1110_v60 = vsel %vm382_vm10, %v1106_v7, %v1108_v59  ;;  %v1175_v61 = vpop.permute.xlu0 %1174 }
 0x13c   :  { %1557 = vmatprep.subr.msk.bf16.mxu1 %vm102_vm0, %v1110_v60 }
 0x13e   :  { %v1238_v1 = vpop.permute.xlu1 %1237 }
 0x13f   :  { %v1240_v2 = vpop.permute.xlu0 %1239 }
 0x140   :  { %1552 = vmatmul.mubr.msk.bf16.vlgmr.msra.gmra.mxu1 %vm98_vm2, %v1550_v63  ;;  %1555 = vmatmul.mubr.msk.bf16.vlgmr.msra.gmra.mxu0 %vm98_vm2, %v1553_v0  ;;  %v1243_v10 = vsel %vm538_vm11, %v1238_v1, %v1240_v2 }
 0x141   :  { %1135 = vmatpush1.bf16.msra.mxu1 %v1115_v4  ;;  %1152 = vmatprep.mubr.bf16.mxu1 %v1618_v43  ;;  %v1249_v15 = vsel %vm102_vm0, %v1243_v10, 0 }
 0x142   :  { %v1242_v6 = vpop.permute.xlu1 %1241  ;;  %1219 = vmatprep.mubr.bf16.mxu0 %v1618_v43 }
 0x143   :  { %v1244_v8 = vsel %vm538_vm11, %v1240_v2, %v1242_v6  ;;  %v1299_v9 = vpop.permute.xlu0 %1298 }
 0x144   :  { %1563 = vmatprep.subr.msk.bf16.mxu1 %vm102_vm0, %v1244_v8 }
 0x146   :  { %v1173_v12 = vpop.permute.xlu1 %1172 }
 0x147   :  { %v1176_v13 = vsel %vm460_vm12, %v1171_v25, %v1173_v12  ;;  %v1177_v14 = vsel %vm460_vm12, %v1173_v12, %v1175_v61  ;;  %v1303_v22 = vpop.permute.xlu0 %1302 }
 0x148   :  { %v1182_v18 = vsel %vm102_vm0, %v1176_v13, 0  ;;  %1558 = vmatmul.mubr.msk.bf16.vlgmr.msra.gmra.mxu1 %vm98_vm2, %v1556_v11  ;;  %1560 = vmatprep.subr.msk.bf16.mxu0 %vm102_vm0, %v1177_v14 }
 0x149   :  { %1269 = vmatpush1.bf16.msra.mxu1 %v1249_v15  ;;  %1202 = vmatpush1.bf16.msra.mxu0 %v1182_v18 }
 0x14a   :  { %v1301_v23 = vpop.permute.xlu1 %1300  ;;  %1286 = vmatprep.mubr.bf16.mxu1 %v1618_v43 }
 0x14b   :  { %v1304_v24 = vsel %vm601_vm13, %v1299_v9, %v1301_v23  ;;  %v1305_v26 = vsel %vm601_vm13, %v1301_v23, %v1303_v22  ;;  %v1368_v32 = vpop.permute.xlu0 %1367 }
 0x14c   :  { %v1310_v27 = vsel %vm102_vm0, %v1304_v24, 0  ;;  %1561 = vmatmul.mubr.msk.bf16.vlgmr.msra.gmra.mxu0 %vm98_vm2, %v1559_v20  ;;  %1566 = vmatprep.subr.msk.bf16.mxu0 %vm102_vm0, %v1305_v26 }
 0x14d   :  { %1330 = vmatpush1.bf16.msra.mxu0 %v1310_v27  ;;  %1347 = vmatprep.mubr.bf16.mxu0 %v1618_v43 }
 0x14e   :  { %v1366_v30 = vpop.permute.xlu1 %1365 }
 0x14f   :  { %v1371_v33 = vsel %vm679_vm14, %v1366_v30, %v1368_v32 }
 0x150   :  { %1564 = vmatmul.mubr.msk.bf16.vlgmr.msra.gmra.mxu1 %vm98_vm2, %v1562_v28  ;;  %v1377_v39 = vsel %vm102_vm0, %v1371_v33, 0 }
 0x151   :  { %1414 = vmatprep.mubr.bf16.mxu1 %v1618_v43 }
 0x152   :  { %v1370_v36 = vpop.permute.xlu1 %1369 }
 0x153   :  { %v1372_v37 = vsel %vm679_vm14, %v1368_v32, %v1370_v36 }
 0x154   :  { %1567 = vmatmul.mubr.msk.bf16.vlgmr.msra.gmra.mxu0 %vm98_vm2, %v1565_v34  ;;  %1569 = vmatprep.subr.msk.bf16.mxu1 %vm102_vm0, %v1372_v37  ;;  %vm794_vm0 = vcmask 138240  }
 0x155   :  { %1397 = vmatpush1.bf16.msra.mxu1 %v1377_v39 }
 0x158   :  { %1570 = vmatmul.mubr.msk.bf16.vlgmr.msra.gmra.mxu1 %vm98_vm2, %v1568_v40  ;;  %v738_v49 = vpop.permute.xlu0 %737 }
 0x15c   :  { %v2061_v54 = vpop.permute.xlu0 %1436 }
 0x15f   :  { %v143_v41 = vpop.f32.mrf.mxu0  ;;  %v2059_v16 = vpop.permute.xlu1 %1428 }
 0x160   :  { %v194_v43 = vadd.f32 %v193_v29, %v143_v41  ;;  %v2065_v61 = vpop.permute.xlu0 %1446 }
 0x161   :  { %v145_v42 = vpop.f32.mrf.mxu0 }
 0x162   :  { %v196_v44 = vadd.f32 %v195_v31, %v145_v42 }
 0x163   :  { %v147_v21 = vpop.f32.mrf.mxu0  ;;  %v746_v50 = vpop.permute.xlu1 %745 }
 0x164   :  { %v766_v13 = vpop.permute.xlu0 %765 }
 0x165   :  { %v148_v19 = vpop.f32.mrf.mxu0 }
 0x167   :  { %v2063_v55 = vpop.permute.xlu1 %755 }
 0x168   :  { %v779_v31 = vpop.permute.xlu0 %778 }
 0x16b   :  { %v764_v62 = vpop.permute.xlu1 %763 }
 0x16c   :  { %v2068_v37 = vsel %vm382_vm10, %v779_v31, %v764_v62 }
 0x16f   :  { %v768_v14 = vpop.permute.xlu1 %767 }
 0x173   :  { %v781_v32 = vpop.permute.xlu1 %780 }
 0x174   :  { %v2071_v39 = vsel %vm382_vm10, %v764_v62, %v781_v32 }
 0x1d0   :  { %v365_v17 = vpop.f32.mrf.mxu1 }
 0x1d2   :  { %v367_v45 = vpop.f32.mrf.mxu1 }
 0x1d4   :  { %v369_v46 = vpop.f32.mrf.mxu1 }
 0x1d6   :  { %v370_v7 = vpop.f32.mrf.mxu1 }
 0x1d8   :  { %v285_v47 = vpop.f32.mrf.mxu0 }
 0x1d9   :  { %v292_v25 = vadd.f32 %v285_v47, %v194_v43 }
 0x1da   :  { %v287_v48 = vpop.f32.mrf.mxu0 }
 0x1db   :  { %v293_v58 = vadd.f32 %v287_v48, %v196_v44  ;;  %v372_v60 = vadd.f32 %v365_v17, %v292_v25 }
 0x1dc   :  { %v289_v51 = vpop.f32.mrf.mxu0 }
 0x1dd   :  { %v373_v1 = vadd.f32 %v367_v45, %v293_v58 }
 0x1de   :  { %v290_v52 = vpop.f32.mrf.mxu0 }
 0x1e0   :  { %v428_v53 = vpop.f32.mrf.mxu0 }
 0x1e1   :  { %v435_v2 = vadd.f32 %v428_v53, %v372_v60 }
 0x1e2   :  { %v430_v56 = vpop.f32.mrf.mxu0 }
 0x1e3   :  { %v436_v8 = vadd.f32 %v430_v56, %v373_v1 }
 0x1e4   :  { %v432_v57 = vpop.f32.mrf.mxu0 }
 0x1e6   :  { %v433_v59 = vpop.f32.mrf.mxu0 }
 0x1e7   :  { %v2077_v59 = vsel %vm382_vm10, %v764_v62, %v766_v13 }
 0x1e8   :  { %v506_v63 = vpop.f32.mrf.mxu1  ;;  %v584_v0 = vpop.f32.mrf.mxu0 }
 0x1e9   :  { %v513_v9 = vadd.f32 %v506_v63, %v435_v2  ;;  %v2081_v2 = vsel %vm382_vm10, %v766_v13, %v768_v14 }
 0x1ea   :  { %v508_v4 = vpop.f32.mrf.mxu1  ;;  %v586_v6 = vpop.f32.mrf.mxu0 }
 0x1eb   :  { %v514_v12 = vadd.f32 %v508_v4, %v436_v8  ;;  %v591_v20 = vadd.f32 %v584_v0, %v513_v9 }
 0x1ec   :  { %v510_v10 = vpop.f32.mrf.mxu1  ;;  %v588_v11 = vpop.f32.mrf.mxu0 }
 0x1ed   :  { %v592_v24 = vadd.f32 %v586_v6, %v514_v12 }
 0x1ee   :  { %v511_v15 = vpop.f32.mrf.mxu1  ;;  %v589_v18 = vpop.f32.mrf.mxu0 }
 0x1f0   :  { %v647_v22 = vpop.f32.mrf.mxu1  ;;  %v725_v23 = vpop.f32.mrf.mxu0 }
 0x1f1   :  { %v654_v26 = vadd.f32 %v647_v22, %v591_v20 }
 0x1f2   :  { %v649_v27 = vpop.f32.mrf.mxu1  ;;  %v727_v28 = vpop.f32.mrf.mxu0 }
 0x1f3   :  { %v655_v29 = vadd.f32 %v649_v27, %v592_v24  ;;  %v732_v30 = vadd.f32 %v725_v23, %v654_v26 }
 0x1f4   :  { %v651_v33 = vpop.f32.mrf.mxu1  ;;  %v729_v34 = vpop.f32.mrf.mxu0 }
 0x1f5   :  { %v740_v35 = vadd.f32 %v738_v49, %v732_v30  ;;  %v733_v36 = vadd.f32 %v727_v28, %v655_v29 }
 0x1f6   :  { %v652_v38 = vpop.f32.mrf.mxu1  ;;  %v730_v40 = vpop.f32.mrf.mxu0 }
 0x1f7   :  { %v748_v41 = vmul.f32 %v746_v50, %v740_v35  ;;  %v741_v43 = vadd.f32 %v738_v49, %v733_v36  ;;  %v786_v19 = vmul.f32 %v2068_v37, %v740_v35 }
 0x1f8   :  { %v911_v42 = vpop.f32.mrf.mxu1  ;;  %v961_v44 = vpop.f32.mrf.mxu0 }
 0x1f9   :  { %1591 = vtanh.f32 %v748_v41  ;;  %v749_v21 = vmul.f32 %v746_v50, %v741_v43  ;;  %v787_v17 = vmul.f32 %v2071_v39, %v741_v43  ;;  %v962_v8 = vadd.f32 %v961_v44, %v911_v42 }
 0x1fa   :  { %v913_v45 = vpop.f32.mrf.mxu1  ;;  %v963_v46 = vpop.f32.mrf.mxu0 }
 0x1fb   :  { %1593 = vtanh.f32 %v749_v21  ;;  %v790_v7 = vcombine.high %v786_v19, %v787_v17  ;;  %v964_v11 = vadd.f32 %v963_v46, %v913_v45 }
 0x1fc   :  { %v915_v47 = vpop.f32.mrf.mxu1  ;;  %v965_v48 = vpop.f32.mrf.mxu0 }
 0x1fd   :  { %791 = vrot.lane.b32.xlu0 %v790_v7, %s1624_s3 }
 0x1fe   :  { %v916_v51 = vpop.f32.mrf.mxu1  ;;  %v966_v52 = vpop.f32.mrf.mxu0 }
 0x200   :  { %v1026_v49 = vpop.f32.mrf.mxu1  ;;  %v1093_v53 = vpop.f32.mrf.mxu0 }
 0x201   :  { %v1033_v12 = vadd.f32 %v1026_v49, %v962_v8 }
 0x202   :  { %v1028_v56 = vpop.f32.mrf.mxu1  ;;  %v1095_v25 = vpop.f32.mrf.mxu0 }
 0x203   :  { %v1034_v22 = vadd.f32 %v1028_v56, %v964_v11  ;;  %v1100_v27 = vadd.f32 %v1093_v53, %v1033_v12 }
 0x204   :  { %v1030_v50 = vpop.f32.mrf.mxu1  ;;  %v1097_v57 = vpop.f32.mrf.mxu0 }
 0x205   :  { %v1101_v30 = vadd.f32 %v1095_v25, %v1034_v22 }
 0x206   :  { %v1592_v58 = vpop.eup %1591  ;;  %v1031_v60 = vpop.f32.mrf.mxu1 }
 0x207   :  { %v1098_v63 = vpop.f32.mrf.mxu0  ;;  %v758_v0 = vmul.f32 %v1592_v58, %v2063_v55 }
 0x208   :  { %v1594_v1 = vpop.eup %1593  ;;  %v1154_v4 = vpop.f32.mrf.mxu1 }
 0x209   :  { %v759_v6 = vmul.f32 %v1594_v1, %v2063_v55  ;;  %v774_v9 = vmul.f32 %v2077_v59, %v758_v0  ;;  %v1161_v31 = vadd.f32 %v1154_v4, %v1100_v27 }
 0x20a   :  { %v1156_v10 = vpop.f32.mrf.mxu1 }
 0x20b   :  { %v775_v62 = vmul.f32 %v2081_v2, %v759_v6  ;;  %v800_v15 = vmul.f32 1.442695, %v774_v9  ;;  %v828_v13 = vsel %vm823_vm15, %v774_v9, 0.0  ;;  %v1162_v34 = vadd.f32 %v1156_v10, %v1101_v30 }
 0x20c   :  { %v1158_v18 = vpop.f32.mrf.mxu1  ;;  %v1221_v20 = vpop.f32.mrf.mxu0 }
 0x20d   :  { %v802_v23 = vmul.f32 1.442695, %v775_v62  ;;  %v829_v14 = vsel %vm823_vm15, %v775_v62, 0.0  ;;  %1595 = vpow2.f32 %v800_v15  ;;  %v1228_v35 = vadd.f32 %v1221_v20, %v1161_v31  ;;  %v1607_v20 = vld [vmem:[%s2138_s0 + $0x8] sm:$0xf] }
 0x20e   :  { %v1159_v24 = vpop.f32.mrf.mxu1  ;;  %v1223_v55 = vpop.f32.mrf.mxu0  ;;  %v830_v26 = vadd.f32 %v829_v14, %v828_v13  ;;  %v1608_v13 = vld [vmem:[%s2138_s0] sm:$0xff] }
 0x20f   :  { %1597 = vpow2.f32 %v802_v23  ;;  %v1229_v40 = vadd.f32 %v1223_v55, %v1162_v34 }
 0x210   :  { %v1225_v28 = vpop.f32.mrf.mxu0  ;;  %v1288_v29 = vpop.f32.mrf.mxu1 }
 0x211   :  { %v1295_v41 = vadd.f32 %v1288_v29, %v1228_v35 }
 0x212   :  { %v1226_v32 = vpop.f32.mrf.mxu0  ;;  %v1290_v33 = vpop.f32.mrf.mxu1 }
 0x213   :  { %v1296_v44 = vadd.f32 %v1290_v33, %v1229_v40 }
 0x214   :  { %v1292_v36 = vpop.f32.mrf.mxu1  ;;  %v1349_v38 = vpop.f32.mrf.mxu0 }
 0x215   :  { %v1356_v21 = vadd.f32 %v1349_v38, %v1295_v41 }
 0x216   :  { %v1293_v43 = vpop.f32.mrf.mxu1  ;;  %v1351_v42 = vpop.f32.mrf.mxu0 }
 0x217   :  { %v1357_v45 = vadd.f32 %v1351_v42, %v1296_v44 }
 0x218   :  { %v1416_v19 = vpop.f32.mrf.mxu1  ;;  %v1353_v17 = vpop.f32.mrf.mxu0 }
 0x219   :  { %v1423_v46 = vadd.f32 %v1416_v19, %v1356_v21 }
 0x21a   :  { %v1418_v7 = vpop.f32.mrf.mxu1  ;;  %v1354_v47 = vpop.f32.mrf.mxu0 }
 0x21b   :  { %v1596_v48 = vpop.eup %1595  ;;  %v1431_v51 = vadd.f32 %v2059_v16, %v1423_v46  ;;  %v1424_v52 = vadd.f32 %v1418_v7, %v1357_v45 }
 0x21c   :  { %v1598_v49 = vpop.eup %1597  ;;  %v1420_v53 = vpop.f32.mrf.mxu1 }
 0x21d   :  { %v1439_v56 = vmul.f32 %v2061_v54, %v1431_v51  ;;  %v1432_v25 = vadd.f32 %v2059_v16, %v1424_v52  ;;  %v806_v50 = vcombine.low %v1596_v48, %v1598_v49  ;;  %v1453_v58 = vmul.f32 %v1431_v51, %v2068_v37 }
 0x21e   :  { %v1421_v57 = vpop.f32.mrf.mxu1 }
 0x21f   :  { %1599 = vtanh.f32 %v1439_v56  ;;  %v1440_v60 = vmul.f32 %v2061_v54, %v1432_v25  ;;  %v1454_v63 = vmul.f32 %v1432_v25, %v2071_v39  ;;  %807 = vrot.lane.b32.xlu0 %v806_v50, %s1624_s3 }
 0x221   :  { %1601 = vtanh.f32 %v1440_v60  ;;  %v1457_v0 = vcombine.high %v1453_v58, %v1454_v63 }
 0x223   :  { %1458 = vrot.lane.b32.xlu1 %v1457_v0, %s1624_s3 }
 0x22c   :  { %v1600_v1 = vpop.eup %1599 }
 0x22d   :  { %v1449_v4 = vmul.f32 %v1600_v1, %v2065_v61 }
 0x22e   :  { %v1602_v6 = vpop.eup %1601 }
 0x22f   :  { %v1450_v16 = vmul.f32 %v1602_v6, %v2065_v61  ;;  %v1451_v8 = vmul.f32 %v1449_v4, %v2077_v59 }
 0x231   :  { %v1452_v37 = vmul.f32 %v1450_v16, %v2081_v2  ;;  %v1466_v9 = vmul.f32 1.442695, %v1451_v8  ;;  %v1494_v62 = vsel %vm823_vm15, %v1451_v8, 0.0 }
 0x233   :  { %v1468_v54 = vmul.f32 1.442695, %v1452_v37  ;;  %1603 = vpow2.f32 %v1466_v9  ;;  %v1495_v12 = vsel %vm823_vm15, %v1452_v37, 0.0 }
 0x234   :  { %v1496_v15 = vadd.f32 %v1495_v12, %v1494_v62 }
 0x235   :  { %1605 = vpow2.f32 %v1468_v54 }
 0x23e   :  { %831 = vadd.xlane.f32.xlu0 %v830_v26 }
 0x240   :  { %v1604_v39 = vpop.eup %1603 }
 0x242   :  { %v1606_v10 = vpop.eup %1605 }
 0x243   :  { %v1472_v11 = vcombine.low %v1604_v39, %v1606_v10 }
 0x245   :  { %1473 = vrot.lane.b32.xlu1 %v1472_v11, %s1624_s3 }
 0x269   :  { %1497 = vadd.xlane.f32.xlu1 %v1496_v15 }
 0x26f   :  { %v792_v61 = vpop.permute.xlu0 %791 }
 0x270   :  { %v793_v59 = vrot.slane %v792_v61, 4 }
 0x272   :  { %v795_v2 = vsel %vm794_vm0, %v793_v59, %v792_v61  ;;  %v799_v22 = vadd.f32 %v1607_v20, %v793_v59 }
 0x273   :  { %v798_v14 = vadd.f32 %v1608_v13, %v795_v2 }
 0x291   :  { %v808_v18 = vpop.permute.xlu0 %807 }
 0x292   :  { %v809_v23 = vrot.slane %v808_v18, 4 }
 0x294   :  { %v810_v24 = vsel %vm794_vm0, %v809_v23, %v808_v18  ;;  %v814_v55 = vmul.f32 %v809_v23, %v799_v22 }
 0x295   :  { %v813_v26 = vmul.f32 %v810_v24, %v798_v14  ;;  %v1459_v27 = vpop.permute.xlu1 %1458 }
 0x296   :  { %819 = vrot.lane.b32.xlu1 %v814_v55, %s1616_s1  ;;  %v1460_v28 = vrot.slane %v1459_v27, 4 }
 0x297   :  { %817 = vrot.lane.b32.xlu0 %v813_v26, %s1616_s1 }
 0x298   :  { %v1461_v29 = vsel %vm794_vm0, %v1460_v28, %v1459_v27  ;;  %v1465_v31 = vadd.f32 %v1815_v5, %v1460_v28 }
 0x299   :  { %v1464_v33 = vadd.f32 %v1804_v3, %v1461_v29 }
 0x2b7   :  { %v1474_v30 = vpop.permute.xlu1 %1473 }
 0x2b8   :  { %v1475_v32 = vrot.slane %v1474_v30, 4 }
 0x2ba   :  { %v1476_v34 = vsel %vm794_vm0, %v1475_v32, %v1474_v30  ;;  %v1480_v35 = vmul.f32 %v1475_v32, %v1465_v31 }
 0x2bb   :  { %v1479_v36 = vmul.f32 %v1476_v34, %v1464_v33 }
 0x2bc   :  { %1485 = vrot.lane.b32.xlu1 %v1480_v35, %s1616_s1 }
 0x2bd   :  { %1483 = vrot.lane.b32.xlu0 %v1479_v36, %s1616_s1 }
 0x2c7   :  { %v832_v38 = vpop.xlane.xlu0 %831 }
 0x2c8   :  { %v833_v40 = vsel %vm823_vm15, %v832_v38, 0.0 }
 0x2c9   :  { %v834_v41 = vrot.slane %v833_v40, 4 }
 0x2cb   :  { %v835_v43 = vadd.f32 %v834_v41, %v833_v40 }
 0x2cd   :  { %v836_v42 = vrot.slane %v835_v43, 2 }
 0x2cf   :  { %v837_v44 = vadd.f32 %v836_v42, %v835_v43 }
 0x2d1   :  { %v838_v21 = vrot.slane %v837_v44, 1 }
 0x2d3   :  { %v839_v5 = vadd.f32 %v838_v21, %v837_v44 }
 0x2d5   :  { %841 = vst.msk [vmem:[%s2144_s8] sm:$0x1] %vm840_vm1, %v839_v5 }
 0x2f2   :  { %v1498_v3 = vpop.xlane.xlu1 %1497 }
 0x2f3   :  { %v1499_v19 = vsel %vm823_vm15, %v1498_v3, 0.0 }
 0x2f4   :  { %v1500_v17 = vrot.slane %v1499_v19, 4 }
 0x2f6   :  { %v1501_v45 = vadd.f32 %v1500_v17, %v1499_v19 }
 0x2f8   :  { %v1502_v46 = vrot.slane %v1501_v45, 2 }
 0x2fa   :  { %v1503_v7 = vadd.f32 %v1502_v46, %v1501_v45 }
 0x2fc   :  { %v1504_v47 = vrot.slane %v1503_v7, 1 }
 0x2fe   :  { %v1505_v48 = vadd.f32 %v1504_v47, %v1503_v7 }
 0x300   :  { %1572 = vst.msk [vmem:[%s2144_s8 + $0x1] sm:$0x1] %vm840_vm1, %v1505_v48 }
 0x308   :  { %v820_v51 = vpop.permute.xlu1 %819 }
 0x309   :  { %v822_v52 = vrot.slane %v820_v51, 4  ;;  %v818_v49 = vpop.permute.xlu0 %817 }
 0x30a   :  { %v821_v53 = vrot.slane %v818_v49, 4 }
 0x30c   :  { %v824_v56 = vsel %vm823_vm15, %v821_v53, %v822_v52 }
 0x30d   :  { %v825_v25 = vsel %vm382_vm10, %v818_v49, %v824_v56 }
 0x30e   :  { %827 = vst [vmem:[%s2145_s7] sm:$0xff] %v825_v25 }
 0x32e   :  { %v1486_v50 = vpop.permute.xlu1 %1485 }
 0x32f   :  { %v1488_v57 = vrot.slane %v1486_v50, 4  ;;  %v1484_v58 = vpop.permute.xlu0 %1483 }
 0x330   :  { %v1487_v60 = vrot.slane %v1484_v58, 4 }
 0x332   :  { %v1489_v63 = vsel %vm823_vm15, %v1487_v60, %v1488_v57 }
 0x333   :  { %v1490_v0 = vsel %vm382_vm10, %v1484_v58, %v1489_v63 }
 0x334   :  { %1571 = vst [vmem:[%s2145_s7 + $0x8] sm:$0xff] %v1490_v0 }

</bundles_post_ra>
